<compile_context>
chip_gen: v6e
topology: v6e:2x2x1
jax: 0.10.0
libtpu: 0.0.40
codegen_flags: <defaults>
</compile_context>

<pallas_src>
import functools

import jax
import jax.numpy as jnp
import numpy as np
from jax.experimental import pallas as pl
from jax.experimental.pallas import tpu as pltpu

LANE = 128      # f32/bf16 lane width
SUBLANE = 8     # f32 sublane count


def _rup(n, m):
    return int(((n + m - 1) // m) * m)


def _pad2d(a, rows, cols):
    return jnp.pad(a, ((0, rows - a.shape[0]), (0, cols - a.shape[1])))


# ----------------------------------------------------------------------------
# One-time weight packing (offline w.r.t. the jitted forward).
# ----------------------------------------------------------------------------
def pack_params(params, input_dim, x_dim):
    """Pad / pack all weights ONCE into a few bf16 slabs (grouped by padded
    shape, split into encoder vs decoder+c2s phases) plus one f32 bias slab,
    and build the static execution plan the kernel unrolls over.

    Returns (packed, plan):
      packed = (*enc_slabs, *post_slabs, bias_slab)   # jnp arrays (jit args)
      plan   = static Python metadata (baked into the traced kernel).
    """
    T, X = input_dim
    flat = T * X
    ic_dim = int(np.prod(input_dim[1:]))
    latent = int(params["encoder"][-1][0].shape[1])
    tf_dim = 1 + x_dim
    out_dim = int(params["c2s"][-1][0].shape[1])

    # Permute c2s layer-0 rows from [t, f, z] to [z, t, f] (exact) so the
    # concat can be rebuilt in-kernel as z + (host-preshifted [t, f]).
    wc0, bc0 = params["c2s"][0]
    wc0 = jnp.concatenate([wc0[tf_dim:tf_dim + latent], wc0[:tf_dim]], axis=0)

    layers = []                                   # (phase, w[in,out], b)
    for w, b in params["encoder"]:
        layers.append(("enc", w, b))
    for w, b in params["decoder"]:
        layers.append(("post", w, b))
    layers.append(("post", wc0, bc0))
    for w, b in params["c2s"][1:]:
        layers.append(("post", w, b))

    max_out_p = max(_rup(w.shape[1], LANE) for _, w, _ in layers)

    # Group layers by (phase, padded in, padded out) -> weight slabs.
    groups, order = {}, []
    for li, (phase, w, _) in enumerate(layers):
        key = (phase, _rup(w.shape[0], LANE), _rup(w.shape[1], LANE))
        if key not in groups:
            groups[key] = []
            order.append(key)
        groups[key].append(li)

    enc_keys = [k for k in order if k[0] == "enc"]
    post_keys = [k for k in order if k[0] == "post"]

    layer_loc = {}

    def build_slabs(keys):
        slabs = []
        for si, key in enumerate(keys):
            _, in_p, out_p = key
            mats = []
            for k, li in enumerate(groups[key]):
                _, w, _ = layers[li]
                mats.append(_pad2d(jnp.asarray(w, jnp.float32), in_p, out_p))
                layer_loc[li] = (si, k)
            slabs.append(jnp.stack(mats).astype(jnp.bfloat16))
        return slabs

    enc_slabs = build_slabs(enc_keys)
    post_slabs = build_slabs(post_keys)

    bias_slab = jnp.stack([
        jnp.pad(jnp.asarray(b, jnp.float32),
                (0, max_out_p - b.shape[0])).reshape(1, max_out_p)
        for _, _, b in layers
    ])                                           # (n_layers, 1, max_out_p) f32

    def subnet_plan(start, count):
        out = []
        for j in range(count):
            li = start + j
            si, k = layer_loc[li]
            out_p = _rup(layers[li][1].shape[1], LANE)
            out.append((si, k, li, out_p, j < count - 1))    # (..., relu?)
        return tuple(out)

    n_enc = len(params["encoder"])
    n_dec = len(params["decoder"])
    n_c2s = len(params["c2s"])

    plan = dict(
        n_enc_slabs=len(enc_slabs),
        n_post_slabs=len(post_slabs),
        post_slab_shapes=tuple(tuple(int(d) for d in s.shape) for s in post_slabs),
        enc_plan=subnet_plan(0, n_enc),
        dec_plan=subnet_plan(n_enc, n_dec),
        c2s_plan=subnet_plan(n_enc + n_dec, n_c2s),
        enc_in_p=_rup(flat, LANE),
        dec_in_p=_rup(latent + ic_dim, LANE),
        c2s_in_p=_rup(tf_dim + latent, LANE),
        latent=latent, tf_dim=tf_dim,
        flat=flat, ic_dim=ic_dim, out_dim=out_dim,
        T=int(T), X=int(X),
    )
    packed = tuple(enc_slabs) + tuple(post_slabs) + (bias_slab,)
    return packed, plan


# ----------------------------------------------------------------------------
# Fused kernel: whole forward in one invocation.
# refs = [x_flat, x0_shifted, tf_shifted,
#         enc_slab_0..E-1 (VMEM),  post_slab_0..P-1 (HBM/ANY),  bias_slab,
#         recon_out, ft1_out,
#         post_vmem_0..P-1 (scratch), dma_sems]
# ----------------------------------------------------------------------------
def _fused_kernel(*refs, plan):
    nE, nP = plan["n_enc_slabs"], plan["n_post_slabs"]
    idx = 3
    x_flat_ref, x0_ref, tf_ref = refs[0], refs[1], refs[2]
    enc_refs = refs[idx:idx + nE]; idx += nE
    post_hbm = refs[idx:idx + nP]; idx += nP
    bias_ref = refs[idx]; idx += 1
    recon_ref = refs[idx]; idx += 1
    ft1_ref = refs[idx]; idx += 1
    post_vmem = refs[idx:idx + nP]; idx += nP
    sem = refs[idx]

    # Kick off decoder / context-to-sol weight DMAs (HBM -> VMEM scratch) so
    # they stream in behind the encoder matmuls; each slab is awaited lazily
    # right before the first layer that consumes it.
    copies = [pltpu.make_async_copy(post_hbm[j], post_vmem[j], sem.at[j])
              for j in range(nP)]
    for cp in copies:
        cp.start()
    waited = set()

    def run_layers(a, layer_plan, slab_refs, lazy_copies=None):
        for si, k, li, out_p, relu in layer_plan:
            if lazy_copies is not None and si not in waited:
                lazy_copies[si].wait()
                waited.add(si)
            w = slab_refs[si][k]                        # (in_p, out_p) bf16
            b = bias_ref[li][:, :out_p]                 # (1, out_p) f32
            a = jnp.dot(a.astype(jnp.bfloat16), w,
                        preferred_element_type=jnp.float32) + b
            if relu:
                a = jnp.maximum(a, 0.0)
        return a

    def widen(a, width):                                # static; no-op here
        if a.shape[1] == width:
            return a
        pad = jnp.zeros((a.shape[0], width - a.shape[1]), a.dtype)
        return jnp.concatenate([a, pad], axis=1)

    # ---- FCAE encoder (weights resident via auto-DMA'd VMEM inputs) ----
    z = run_layers(x_flat_ref[...], plan["enc_plan"], enc_refs)

    # ---- FCAE decoder: cat(z, x[:,0]) -- x0 is host-preshifted to lanes
    # [latent : latent+ic_dim], so the concat is an add of disjoint lanes.
    zcat = widen(z, plan["dec_in_p"]) + x0_ref[...]
    recon = run_layers(zcat, plan["dec_plan"], post_vmem, copies)

    # ---- ContextToSol: cat(t, f, z) with layer-0 rows pre-permuted to
    # [z, t, f]; [t, f] is host-preshifted to lanes [latent : latent+tf_dim].
    ztf = widen(z, plan["c2s_in_p"]) + tf_ref[...]
    ft1 = run_layers(ztf, plan["c2s_plan"], post_vmem, copies)

    recon_ref[...] = recon.astype(recon_ref.dtype)
    ft1_ref[...] = ft1.astype(ft1_ref.dtype)


# ----------------------------------------------------------------------------
# Forward wrapper: pads the (tiny) per-call activations, launches the kernel.
# ----------------------------------------------------------------------------
def one_dim_model_forward(packed, t, f, sol_context, *, plan):
    B, T, X = sol_context.shape
    nE, nP = plan["n_enc_slabs"], plan["n_post_slabs"]
    enc_slabs = packed[:nE]
    post_slabs = packed[nE:nE + nP]
    bias_slab = packed[nE + nP]

    flat, latent = plan["flat"], plan["latent"]
    tf_dim, ic_dim = plan["tf_dim"], plan["ic_dim"]
    out_dim = plan["out_dim"]
    enc_in_p, dec_in_p, c2s_in_p = plan["enc_in_p"], plan["dec_in_p"], plan["c2s_in_p"]
    recon_out_p = plan["dec_plan"][-1][3]
    ft1_out_p = plan["c2s_plan"][-1][3]

    Bp = max(_rup(B, SUBLANE), SUBLANE)

    # Per-call activation padding only (weights were packed once, offline).
    x_flat = _pad2d(sol_context.reshape(B, flat), Bp, enc_in_p)
    x0 = jnp.pad(sol_context[:, 0],
                 ((0, Bp - B), (latent, dec_in_p - latent - ic_dim)))
    tf = jnp.pad(jnp.concatenate([t, f], axis=1),
                 ((0, Bp - B), (latent, c2s_in_p - latent - tf_dim)))

    all_inputs = (x_flat, x0, tf) + tuple(enc_slabs) + tuple(post_slabs) + (bias_slab,)

    vmem = pl.BlockSpec(memory_space=pltpu.MemorySpace.VMEM)
    hbm = pl.BlockSpec(memory_space=pl.ANY)
    in_specs = [vmem, vmem, vmem] + [vmem] * nE + [hbm] * nP + [vmem]
    out_specs = (vmem, vmem)
    out_shape = (jax.ShapeDtypeStruct((Bp, recon_out_p), jnp.float32),
                 jax.ShapeDtypeStruct((Bp, ft1_out_p), jnp.float32))
    scratch_shapes = (
        [pltpu.VMEM(shape, jnp.bfloat16) for shape in plan["post_slab_shapes"]]
        + [pltpu.SemaphoreType.DMA((nP,))]
    )

    weight_elems = sum(int(np.prod(s.shape)) for s in enc_slabs + post_slabs)
    flops = int(2 * Bp * weight_elems)
    bytes_accessed = int(
        sum(a.size * a.dtype.itemsize for a in all_inputs)
        + sum(int(np.prod(s.shape)) * 4 for s in out_shape)
    )

    kernel = functools.partial(_fused_kernel, plan=plan)

    recon_p, ft1_p = pl.pallas_call(
        kernel,
        out_shape=out_shape,
        in_specs=in_specs,
        out_specs=out_specs,
        scratch_shapes=scratch_shapes,
        compiler_params=pltpu.CompilerParams(vmem_limit_bytes=32 * 1024 * 1024),
        cost_estimate=pl.CostEstimate(flops=flops, transcendentals=0,
                                      bytes_accessed=bytes_accessed),
    )(*all_inputs)

    recon_sol = recon_p[:B, :flat].reshape(B, T, X)
    f_t_1 = ft1_p[:B, :out_dim]
    return recon_sol, f_t_1


# ----------------------------------------------------------------------------
# Parameter init (deterministic, PyTorch-style uniform(-1/sqrt(fan_in), ..))
# ----------------------------------------------------------------------------
def init_linear(key, din, dout):
    kw, kb = jax.random.split(key)
    bound = 1.0 / float(np.sqrt(din))
    w = jax.random.uniform(kw, (din, dout), jnp.float32, -bound, bound)
    b = jax.random.uniform(kb, (dout,), jnp.float32, -bound, bound)
    return w, b


def init_mlp(key, dims):
    keys = jax.random.split(key, len(dims) - 1)
    return [init_linear(k, dims[i], dims[i + 1]) for i, k in enumerate(keys)]


# ----------------------------------------------------------------------------
# Pure-JAX reference.  With weight_dtype=bfloat16 it mirrors the kernel's
# bf16-weight / bf16-activation / f32-accumulate arithmetic.
# ----------------------------------------------------------------------------
def _ref_forward(params, t, f, sol_context, weight_dtype=jnp.float32):
    def mlp(layers, x):
        n = len(layers)
        for i, (w, b) in enumerate(layers):
            x = jnp.dot(x.astype(weight_dtype), w.astype(weight_dtype),
                        preferred_element_type=jnp.float32) + b
            if i < n - 1:
                x = jnp.maximum(x, 0.0)
        return x

    B, T, X = sol_context.shape
    z = mlp(params["encoder"], sol_context.reshape(B, T * X))
    recon = mlp(params["decoder"],
                jnp.concatenate([z, sol_context[:, 0]], axis=1))
    f_t_1 = mlp(params["c2s"], jnp.concatenate([t, f, z], axis=1))
    return recon.reshape(B, T, X), f_t_1


if __name__ == "__main__":
    # Small shapes consistent with the module:
    #   input_dim = (T, X) of sol_context, x_dim = features of f, output_dim
    B = 2
    T, X = 8, 16           # input_dim
    x_dim = 16
    output_dim = 16
    latent_dim = 32        # FCAE.latent_dim
    flat = T * X           # FCAE.input_dim = input_dim[0] * input_dim[1]
    ic_dim = X             # np.prod(input_dim[1:])

    key = jax.random.PRNGKey(0)
    k_enc, k_dec, k_c2s, k_t, k_f, k_sol = jax.random.split(key, 6)

    params = {
        "encoder": init_mlp(k_enc, [flat, 256, 256, 256, 128, 128, latent_dim]),
        "decoder": init_mlp(k_dec, [latent_dim + ic_dim, 128, 128, 256, 256, 256, flat]),
        "c2s": init_mlp(k_c2s, [x_dim + 1 + latent_dim, 200, 200, 200, 200, output_dim]),
    }

    t = jax.random.normal(k_t, (B, 1), jnp.float32)
    f = jax.random.normal(k_f, (B, x_dim), jnp.float32)
    sol_context = jax.random.normal(k_sol, (B, T, X), jnp.float32)

    packed, plan = pack_params(params, (T, X), x_dim)       # one-time packing
    fwd = jax.jit(functools.partial(one_dim_model_forward, plan=plan))

    recon_sol, f_t_1 = fwd(packed, t, f, sol_context)
    jax.block_until_ready((recon_sol, f_t_1))

    assert recon_sol.shape == (B, T, X) and f_t_1.shape == (B, output_dim)

    # Compare against a reference using the same bf16 weight/activation casts.
    ref_recon, ref_ft1 = _ref_forward(params, t, f, sol_context, jnp.bfloat16)
    np.testing.assert_allclose(np.asarray(recon_sol), np.asarray(ref_recon),
                               rtol=2e-2, atol=2e-2)
    np.testing.assert_allclose(np.asarray(f_t_1), np.asarray(ref_ft1),
                               rtol=2e-2, atol=2e-2)

    print("KERNEL_OK")
</pallas_src>

<mosaic_0001>
module attributes {stable_mosaic.version = 11 : i64} {
  func.func @_fused_kernel(%arg0: memref<8x128xf32, #tpu.memory_space<vmem>>, %arg1: memref<8x128xf32, #tpu.memory_space<vmem>>, %arg2: memref<8x128xf32, #tpu.memory_space<vmem>>, %arg3: memref<1x128x256xbf16, #tpu.memory_space<vmem>>, %arg4: memref<2x256x256xbf16, #tpu.memory_space<vmem>>, %arg5: memref<1x256x128xbf16, #tpu.memory_space<vmem>>, %arg6: memref<2x128x128xbf16, #tpu.memory_space<vmem>>, %arg7: memref<2x128x128xbf16, #tpu.memory_space<any>>, %arg8: memref<2x128x256xbf16, #tpu.memory_space<any>>, %arg9: memref<5x256x256xbf16, #tpu.memory_space<any>>, %arg10: memref<2x256x128xbf16, #tpu.memory_space<any>>, %arg11: memref<17x1x256xf32, #tpu.memory_space<vmem>>, %arg12: memref<8x128xf32, #tpu.memory_space<vmem>>, %arg13: memref<8x128xf32, #tpu.memory_space<vmem>>, %arg14: memref<2x128x128xbf16, #tpu.memory_space<vmem>>, %arg15: memref<2x128x256xbf16, #tpu.memory_space<vmem>>, %arg16: memref<5x256x256xbf16, #tpu.memory_space<vmem>>, %arg17: memref<2x256x128xbf16, #tpu.memory_space<vmem>>, %arg18: memref<4x!tpu.dma_semaphore, #tpu.memory_space<semaphore_mem>>) attributes {dimension_semantics = [], scalar_prefetch = 0 : i64, scratch_operands = 5 : i64, tpu.core_type = #tpu.core_type<tc>} {
    %c0_i32 = arith.constant 0 : i32
    %0 = tpu.memref_slice %arg18[%c0_i32] : memref<4x!tpu.dma_semaphore, #tpu.memory_space<semaphore_mem>> -> memref<1x!tpu.dma_semaphore, #tpu.memory_space<semaphore_mem>>
    %1 = tpu.memref_squeeze %0 : memref<1x!tpu.dma_semaphore, #tpu.memory_space<semaphore_mem>> -> memref<!tpu.dma_semaphore, #tpu.memory_space<semaphore_mem>>
    tpu.enqueue_dma source(%arg7 : memref<2x128x128xbf16, #tpu.memory_space<any>>) target(%arg14 : memref<2x128x128xbf16, #tpu.memory_space<vmem>>) target_semaphore(%1 : memref<!tpu.dma_semaphore, #tpu.memory_space<semaphore_mem>>)
    %c1_i32 = arith.constant 1 : i32
    %2 = tpu.memref_slice %arg18[%c1_i32] : memref<4x!tpu.dma_semaphore, #tpu.memory_space<semaphore_mem>> -> memref<1x!tpu.dma_semaphore, #tpu.memory_space<semaphore_mem>>
    %3 = tpu.memref_squeeze %2 : memref<1x!tpu.dma_semaphore, #tpu.memory_space<semaphore_mem>> -> memref<!tpu.dma_semaphore, #tpu.memory_space<semaphore_mem>>
    tpu.enqueue_dma source(%arg8 : memref<2x128x256xbf16, #tpu.memory_space<any>>) target(%arg15 : memref<2x128x256xbf16, #tpu.memory_space<vmem>>) target_semaphore(%3 : memref<!tpu.dma_semaphore, #tpu.memory_space<semaphore_mem>>)
    %c2_i32 = arith.constant 2 : i32
    %4 = tpu.memref_slice %arg18[%c2_i32] : memref<4x!tpu.dma_semaphore, #tpu.memory_space<semaphore_mem>> -> memref<1x!tpu.dma_semaphore, #tpu.memory_space<semaphore_mem>>
    %5 = tpu.memref_squeeze %4 : memref<1x!tpu.dma_semaphore, #tpu.memory_space<semaphore_mem>> -> memref<!tpu.dma_semaphore, #tpu.memory_space<semaphore_mem>>
    tpu.enqueue_dma source(%arg9 : memref<5x256x256xbf16, #tpu.memory_space<any>>) target(%arg16 : memref<5x256x256xbf16, #tpu.memory_space<vmem>>) target_semaphore(%5 : memref<!tpu.dma_semaphore, #tpu.memory_space<semaphore_mem>>)
    %c3_i32 = arith.constant 3 : i32
    %6 = tpu.memref_slice %arg18[%c3_i32] : memref<4x!tpu.dma_semaphore, #tpu.memory_space<semaphore_mem>> -> memref<1x!tpu.dma_semaphore, #tpu.memory_space<semaphore_mem>>
    %7 = tpu.memref_squeeze %6 : memref<1x!tpu.dma_semaphore, #tpu.memory_space<semaphore_mem>> -> memref<!tpu.dma_semaphore, #tpu.memory_space<semaphore_mem>>
    tpu.enqueue_dma source(%arg10 : memref<2x256x128xbf16, #tpu.memory_space<any>>) target(%arg17 : memref<2x256x128xbf16, #tpu.memory_space<vmem>>) target_semaphore(%7 : memref<!tpu.dma_semaphore, #tpu.memory_space<semaphore_mem>>)
    %c0 = arith.constant 0 : index
    %c0_0 = arith.constant 0 : index
    %8 = vector.load %arg0[%c0, %c0_0] : memref<8x128xf32, #tpu.memory_space<vmem>>, vector<8x128xf32>
    %c0_1 = arith.constant 0 : index
    %c0_2 = arith.constant 0 : index
    %c0_3 = arith.constant 0 : index
    %9 = vector.load %arg3[%c0_1, %c0_2, %c0_3] : memref<1x128x256xbf16, #tpu.memory_space<vmem>>, vector<1x128x256xbf16>
    %10 = vector.shape_cast %9 : vector<1x128x256xbf16> to vector<128x256xbf16>
    %c0_4 = arith.constant 0 : index
    %c0_5 = arith.constant 0 : index
    %c0_6 = arith.constant 0 : index
    %11 = vector.load %arg11[%c0_4, %c0_5, %c0_6] : memref<17x1x256xf32, #tpu.memory_space<vmem>>, vector<1x1x256xf32>
    %12 = vector.shape_cast %11 : vector<1x1x256xf32> to vector<1x256xf32>
    %13 = arith.truncf %8 : vector<8x128xf32> to vector<8x128xbf16>
    %cst = arith.constant dense<0.000000e+00> : vector<8x256xf32>
    %14 = tpu.matmul %13, %10, %cst {dimension_numbers = #tpu.dot_dimension_numbers<[1], [0], [0], [1], [0, 0, 1, 1], [], []>} : vector<8x128xbf16>, vector<128x256xbf16>, vector<8x256xf32> -> vector<8x256xf32>
    %15 = vector.broadcast %12 : vector<1x256xf32> to vector<8x256xf32>
    %16 = arith.addf %14, %15 : vector<8x256xf32>
    %cst_7 = arith.constant 0.000000e+00 : f32
    %17 = vector.broadcast %cst_7 : f32 to vector<8x256xf32>
    %18 = arith.maximumf %16, %17 : vector<8x256xf32>
    %c0_8 = arith.constant 0 : index
    %c0_9 = arith.constant 0 : index
    %c0_10 = arith.constant 0 : index
    %19 = vector.load %arg4[%c0_8, %c0_9, %c0_10] : memref<2x256x256xbf16, #tpu.memory_space<vmem>>, vector<1x256x256xbf16>
    %20 = vector.shape_cast %19 : vector<1x256x256xbf16> to vector<256x256xbf16>
    %c1 = arith.constant 1 : index
    %c0_11 = arith.constant 0 : index
    %c0_12 = arith.constant 0 : index
    %21 = vector.load %arg11[%c1, %c0_11, %c0_12] : memref<17x1x256xf32, #tpu.memory_space<vmem>>, vector<1x1x256xf32>
    %22 = vector.shape_cast %21 : vector<1x1x256xf32> to vector<1x256xf32>
    %23 = arith.truncf %18 : vector<8x256xf32> to vector<8x256xbf16>
    %cst_13 = arith.constant dense<0.000000e+00> : vector<8x256xf32>
    %24 = tpu.matmul %23, %20, %cst_13 {dimension_numbers = #tpu.dot_dimension_numbers<[1], [0], [0], [1], [0, 0, 1, 1], [], []>} : vector<8x256xbf16>, vector<256x256xbf16>, vector<8x256xf32> -> vector<8x256xf32>
    %25 = vector.broadcast %22 : vector<1x256xf32> to vector<8x256xf32>
    %26 = arith.addf %24, %25 : vector<8x256xf32>
    %cst_14 = arith.constant 0.000000e+00 : f32
    %27 = vector.broadcast %cst_14 : f32 to vector<8x256xf32>
    %28 = arith.maximumf %26, %27 : vector<8x256xf32>
    %c1_15 = arith.constant 1 : index
    %c0_16 = arith.constant 0 : index
    %c0_17 = arith.constant 0 : index
    %29 = vector.load %arg4[%c1_15, %c0_16, %c0_17] : memref<2x256x256xbf16, #tpu.memory_space<vmem>>, vector<1x256x256xbf16>
    %30 = vector.shape_cast %29 : vector<1x256x256xbf16> to vector<256x256xbf16>
    %c2 = arith.constant 2 : index
    %c0_18 = arith.constant 0 : index
    %c0_19 = arith.constant 0 : index
    %31 = vector.load %arg11[%c2, %c0_18, %c0_19] : memref<17x1x256xf32, #tpu.memory_space<vmem>>, vector<1x1x256xf32>
    %32 = vector.shape_cast %31 : vector<1x1x256xf32> to vector<1x256xf32>
    %33 = arith.truncf %28 : vector<8x256xf32> to vector<8x256xbf16>
    %cst_20 = arith.constant dense<0.000000e+00> : vector<8x256xf32>
    %34 = tpu.matmul %33, %30, %cst_20 {dimension_numbers = #tpu.dot_dimension_numbers<[1], [0], [0], [1], [0, 0, 1, 1], [], []>} : vector<8x256xbf16>, vector<256x256xbf16>, vector<8x256xf32> -> vector<8x256xf32>
    %35 = vector.broadcast %32 : vector<1x256xf32> to vector<8x256xf32>
    %36 = arith.addf %34, %35 : vector<8x256xf32>
    %cst_21 = arith.constant 0.000000e+00 : f32
    %37 = vector.broadcast %cst_21 : f32 to vector<8x256xf32>
    %38 = arith.maximumf %36, %37 : vector<8x256xf32>
    %c0_22 = arith.constant 0 : index
    %c0_23 = arith.constant 0 : index
    %c0_24 = arith.constant 0 : index
    %39 = vector.load %arg5[%c0_22, %c0_23, %c0_24] : memref<1x256x128xbf16, #tpu.memory_space<vmem>>, vector<1x256x128xbf16>
    %40 = vector.shape_cast %39 : vector<1x256x128xbf16> to vector<256x128xbf16>
    %c3 = arith.constant 3 : index
    %c0_25 = arith.constant 0 : index
    %c0_26 = arith.constant 0 : index
    %41 = vector.load %arg11[%c3, %c0_25, %c0_26] : memref<17x1x256xf32, #tpu.memory_space<vmem>>, vector<1x1x256xf32>
    %42 = vector.shape_cast %41 : vector<1x1x256xf32> to vector<1x256xf32>
    %43 = vector.extract_strided_slice %42 {offsets = [0, 0], sizes = [1, 128], strides = [1, 1]} : vector<1x256xf32> to vector<1x128xf32>
    %44 = arith.truncf %38 : vector<8x256xf32> to vector<8x256xbf16>
    %cst_27 = arith.constant dense<0.000000e+00> : vector<8x128xf32>
    %45 = tpu.matmul %44, %40, %cst_27 {dimension_numbers = #tpu.dot_dimension_numbers<[1], [0], [0], [1], [0, 0, 1, 1], [], []>} : vector<8x256xbf16>, vector<256x128xbf16>, vector<8x128xf32> -> vector<8x128xf32>
    %46 = vector.broadcast %43 : vector<1x128xf32> to vector<8x128xf32>
    %47 = arith.addf %45, %46 : vector<8x128xf32>
    %cst_28 = arith.constant 0.000000e+00 : f32
    %48 = vector.broadcast %cst_28 : f32 to vector<8x128xf32>
    %49 = arith.maximumf %47, %48 : vector<8x128xf32>
    %c0_29 = arith.constant 0 : index
    %c0_30 = arith.constant 0 : index
    %c0_31 = arith.constant 0 : index
    %50 = vector.load %arg6[%c0_29, %c0_30, %c0_31] : memref<2x128x128xbf16, #tpu.memory_space<vmem>>, vector<1x128x128xbf16>
    %51 = vector.shape_cast %50 : vector<1x128x128xbf16> to vector<128x128xbf16>
    %c4 = arith.constant 4 : index
    %c0_32 = arith.constant 0 : index
    %c0_33 = arith.constant 0 : index
    %52 = vector.load %arg11[%c4, %c0_32, %c0_33] : memref<17x1x256xf32, #tpu.memory_space<vmem>>, vector<1x1x256xf32>
    %53 = vector.shape_cast %52 : vector<1x1x256xf32> to vector<1x256xf32>
    %54 = vector.extract_strided_slice %53 {offsets = [0, 0], sizes = [1, 128], strides = [1, 1]} : vector<1x256xf32> to vector<1x128xf32>
    %55 = arith.truncf %49 : vector<8x128xf32> to vector<8x128xbf16>
    %cst_34 = arith.constant dense<0.000000e+00> : vector<8x128xf32>
    %56 = tpu.matmul %55, %51, %cst_34 {dimension_numbers = #tpu.dot_dimension_numbers<[1], [0], [0], [1], [0, 0, 1, 1], [], []>} : vector<8x128xbf16>, vector<128x128xbf16>, vector<8x128xf32> -> vector<8x128xf32>
    %57 = vector.broadcast %54 : vector<1x128xf32> to vector<8x128xf32>
    %58 = arith.addf %56, %57 : vector<8x128xf32>
    %cst_35 = arith.constant 0.000000e+00 : f32
    %59 = vector.broadcast %cst_35 : f32 to vector<8x128xf32>
    %60 = arith.maximumf %58, %59 : vector<8x128xf32>
    %c1_36 = arith.constant 1 : index
    %c0_37 = arith.constant 0 : index
    %c0_38 = arith.constant 0 : index
    %61 = vector.load %arg6[%c1_36, %c0_37, %c0_38] : memref<2x128x128xbf16, #tpu.memory_space<vmem>>, vector<1x128x128xbf16>
    %62 = vector.shape_cast %61 : vector<1x128x128xbf16> to vector<128x128xbf16>
    %c5 = arith.constant 5 : index
    %c0_39 = arith.constant 0 : index
    %c0_40 = arith.constant 0 : index
    %63 = vector.load %arg11[%c5, %c0_39, %c0_40] : memref<17x1x256xf32, #tpu.memory_space<vmem>>, vector<1x1x256xf32>
    %64 = vector.shape_cast %63 : vector<1x1x256xf32> to vector<1x256xf32>
    %65 = vector.extract_strided_slice %64 {offsets = [0, 0], sizes = [1, 128], strides = [1, 1]} : vector<1x256xf32> to vector<1x128xf32>
    %66 = arith.truncf %60 : vector<8x128xf32> to vector<8x128xbf16>
    %cst_41 = arith.constant dense<0.000000e+00> : vector<8x128xf32>
    %67 = tpu.matmul %66, %62, %cst_41 {dimension_numbers = #tpu.dot_dimension_numbers<[1], [0], [0], [1], [0, 0, 1, 1], [], []>} : vector<8x128xbf16>, vector<128x128xbf16>, vector<8x128xf32> -> vector<8x128xf32>
    %68 = vector.broadcast %65 : vector<1x128xf32> to vector<8x128xf32>
    %69 = arith.addf %67, %68 : vector<8x128xf32>
    %c0_42 = arith.constant 0 : index
    %c0_43 = arith.constant 0 : index
    %70 = vector.load %arg1[%c0_42, %c0_43] : memref<8x128xf32, #tpu.memory_space<vmem>>, vector<8x128xf32>
    %71 = arith.addf %69, %70 : vector<8x128xf32>
    %c0_i32_44 = arith.constant 0 : i32
    %72 = tpu.memref_slice %arg18[%c0_i32_44] : memref<4x!tpu.dma_semaphore, #tpu.memory_space<semaphore_mem>> -> memref<1x!tpu.dma_semaphore, #tpu.memory_space<semaphore_mem>>
    %73 = tpu.memref_squeeze %72 : memref<1x!tpu.dma_semaphore, #tpu.memory_space<semaphore_mem>> -> memref<!tpu.dma_semaphore, #tpu.memory_space<semaphore_mem>>
    tpu.wait_dma2 semaphore(%73 : memref<!tpu.dma_semaphore, #tpu.memory_space<semaphore_mem>>) src(%arg7 : memref<2x128x128xbf16, #tpu.memory_space<any>>) dst(%arg14 : memref<2x128x128xbf16, #tpu.memory_space<vmem>>)
    %c0_45 = arith.constant 0 : index
    %c0_46 = arith.constant 0 : index
    %c0_47 = arith.constant 0 : index
    %74 = vector.load %arg14[%c0_45, %c0_46, %c0_47] : memref<2x128x128xbf16, #tpu.memory_space<vmem>>, vector<1x128x128xbf16>
    %75 = vector.shape_cast %74 : vector<1x128x128xbf16> to vector<128x128xbf16>
    %c6 = arith.constant 6 : index
    %c0_48 = arith.constant 0 : index
    %c0_49 = arith.constant 0 : index
    %76 = vector.load %arg11[%c6, %c0_48, %c0_49] : memref<17x1x256xf32, #tpu.memory_space<vmem>>, vector<1x1x256xf32>
    %77 = vector.shape_cast %76 : vector<1x1x256xf32> to vector<1x256xf32>
    %78 = vector.extract_strided_slice %77 {offsets = [0, 0], sizes = [1, 128], strides = [1, 1]} : vector<1x256xf32> to vector<1x128xf32>
    %79 = arith.truncf %71 : vector<8x128xf32> to vector<8x128xbf16>
    %cst_50 = arith.constant dense<0.000000e+00> : vector<8x128xf32>
    %80 = tpu.matmul %79, %75, %cst_50 {dimension_numbers = #tpu.dot_dimension_numbers<[1], [0], [0], [1], [0, 0, 1, 1], [], []>} : vector<8x128xbf16>, vector<128x128xbf16>, vector<8x128xf32> -> vector<8x128xf32>
    %81 = vector.broadcast %78 : vector<1x128xf32> to vector<8x128xf32>
    %82 = arith.addf %80, %81 : vector<8x128xf32>
    %cst_51 = arith.constant 0.000000e+00 : f32
    %83 = vector.broadcast %cst_51 : f32 to vector<8x128xf32>
    %84 = arith.maximumf %82, %83 : vector<8x128xf32>
    %c1_52 = arith.constant 1 : index
    %c0_53 = arith.constant 0 : index
    %c0_54 = arith.constant 0 : index
    %85 = vector.load %arg14[%c1_52, %c0_53, %c0_54] : memref<2x128x128xbf16, #tpu.memory_space<vmem>>, vector<1x128x128xbf16>
    %86 = vector.shape_cast %85 : vector<1x128x128xbf16> to vector<128x128xbf16>
    %c7 = arith.constant 7 : index
    %c0_55 = arith.constant 0 : index
    %c0_56 = arith.constant 0 : index
    %87 = vector.load %arg11[%c7, %c0_55, %c0_56] : memref<17x1x256xf32, #tpu.memory_space<vmem>>, vector<1x1x256xf32>
    %88 = vector.shape_cast %87 : vector<1x1x256xf32> to vector<1x256xf32>
    %89 = vector.extract_strided_slice %88 {offsets = [0, 0], sizes = [1, 128], strides = [1, 1]} : vector<1x256xf32> to vector<1x128xf32>
    %90 = arith.truncf %84 : vector<8x128xf32> to vector<8x128xbf16>
    %cst_57 = arith.constant dense<0.000000e+00> : vector<8x128xf32>
    %91 = tpu.matmul %90, %86, %cst_57 {dimension_numbers = #tpu.dot_dimension_numbers<[1], [0], [0], [1], [0, 0, 1, 1], [], []>} : vector<8x128xbf16>, vector<128x128xbf16>, vector<8x128xf32> -> vector<8x128xf32>
    %92 = vector.broadcast %89 : vector<1x128xf32> to vector<8x128xf32>
    %93 = arith.addf %91, %92 : vector<8x128xf32>
    %cst_58 = arith.constant 0.000000e+00 : f32
    %94 = vector.broadcast %cst_58 : f32 to vector<8x128xf32>
    %95 = arith.maximumf %93, %94 : vector<8x128xf32>
    %c1_i32_59 = arith.constant 1 : i32
    %96 = tpu.memref_slice %arg18[%c1_i32_59] : memref<4x!tpu.dma_semaphore, #tpu.memory_space<semaphore_mem>> -> memref<1x!tpu.dma_semaphore, #tpu.memory_space<semaphore_mem>>
    %97 = tpu.memref_squeeze %96 : memref<1x!tpu.dma_semaphore, #tpu.memory_space<semaphore_mem>> -> memref<!tpu.dma_semaphore, #tpu.memory_space<semaphore_mem>>
    tpu.wait_dma2 semaphore(%97 : memref<!tpu.dma_semaphore, #tpu.memory_space<semaphore_mem>>) src(%arg8 : memref<2x128x256xbf16, #tpu.memory_space<any>>) dst(%arg15 : memref<2x128x256xbf16, #tpu.memory_space<vmem>>)
    %c0_60 = arith.constant 0 : index
    %c0_61 = arith.constant 0 : index
    %c0_62 = arith.constant 0 : index
    %98 = vector.load %arg15[%c0_60, %c0_61, %c0_62] : memref<2x128x256xbf16, #tpu.memory_space<vmem>>, vector<1x128x256xbf16>
    %99 = vector.shape_cast %98 : vector<1x128x256xbf16> to vector<128x256xbf16>
    %c8 = arith.constant 8 : index
    %c0_63 = arith.constant 0 : index
    %c0_64 = arith.constant 0 : index
    %100 = vector.load %arg11[%c8, %c0_63, %c0_64] : memref<17x1x256xf32, #tpu.memory_space<vmem>>, vector<1x1x256xf32>
    %101 = vector.shape_cast %100 : vector<1x1x256xf32> to vector<1x256xf32>
    %102 = arith.truncf %95 : vector<8x128xf32> to vector<8x128xbf16>
    %cst_65 = arith.constant dense<0.000000e+00> : vector<8x256xf32>
    %103 = tpu.matmul %102, %99, %cst_65 {dimension_numbers = #tpu.dot_dimension_numbers<[1], [0], [0], [1], [0, 0, 1, 1], [], []>} : vector<8x128xbf16>, vector<128x256xbf16>, vector<8x256xf32> -> vector<8x256xf32>
    %104 = vector.broadcast %101 : vector<1x256xf32> to vector<8x256xf32>
    %105 = arith.addf %103, %104 : vector<8x256xf32>
    %cst_66 = arith.constant 0.000000e+00 : f32
    %106 = vector.broadcast %cst_66 : f32 to vector<8x256xf32>
    %107 = arith.maximumf %105, %106 : vector<8x256xf32>
    %c2_i32_67 = arith.constant 2 : i32
    %108 = tpu.memref_slice %arg18[%c2_i32_67] : memref<4x!tpu.dma_semaphore, #tpu.memory_space<semaphore_mem>> -> memref<1x!tpu.dma_semaphore, #tpu.memory_space<semaphore_mem>>
    %109 = tpu.memref_squeeze %108 : memref<1x!tpu.dma_semaphore, #tpu.memory_space<semaphore_mem>> -> memref<!tpu.dma_semaphore, #tpu.memory_space<semaphore_mem>>
    tpu.wait_dma2 semaphore(%109 : memref<!tpu.dma_semaphore, #tpu.memory_space<semaphore_mem>>) src(%arg9 : memref<5x256x256xbf16, #tpu.memory_space<any>>) dst(%arg16 : memref<5x256x256xbf16, #tpu.memory_space<vmem>>)
    %c0_68 = arith.constant 0 : index
    %c0_69 = arith.constant 0 : index
    %c0_70 = arith.constant 0 : index
    %110 = vector.load %arg16[%c0_68, %c0_69, %c0_70] : memref<5x256x256xbf16, #tpu.memory_space<vmem>>, vector<1x256x256xbf16>
    %111 = vector.shape_cast %110 : vector<1x256x256xbf16> to vector<256x256xbf16>
    %c9 = arith.constant 9 : index
    %c0_71 = arith.constant 0 : index
    %c0_72 = arith.constant 0 : index
    %112 = vector.load %arg11[%c9, %c0_71, %c0_72] : memref<17x1x256xf32, #tpu.memory_space<vmem>>, vector<1x1x256xf32>
    %113 = vector.shape_cast %112 : vector<1x1x256xf32> to vector<1x256xf32>
    %114 = arith.truncf %107 : vector<8x256xf32> to vector<8x256xbf16>
    %cst_73 = arith.constant dense<0.000000e+00> : vector<8x256xf32>
    %115 = tpu.matmul %114, %111, %cst_73 {dimension_numbers = #tpu.dot_dimension_numbers<[1], [0], [0], [1], [0, 0, 1, 1], [], []>} : vector<8x256xbf16>, vector<256x256xbf16>, vector<8x256xf32> -> vector<8x256xf32>
    %116 = vector.broadcast %113 : vector<1x256xf32> to vector<8x256xf32>
    %117 = arith.addf %115, %116 : vector<8x256xf32>
    %cst_74 = arith.constant 0.000000e+00 : f32
    %118 = vector.broadcast %cst_74 : f32 to vector<8x256xf32>
    %119 = arith.maximumf %117, %118 : vector<8x256xf32>
    %c1_75 = arith.constant 1 : index
    %c0_76 = arith.constant 0 : index
    %c0_77 = arith.constant 0 : index
    %120 = vector.load %arg16[%c1_75, %c0_76, %c0_77] : memref<5x256x256xbf16, #tpu.memory_space<vmem>>, vector<1x256x256xbf16>
    %121 = vector.shape_cast %120 : vector<1x256x256xbf16> to vector<256x256xbf16>
    %c10 = arith.constant 10 : index
    %c0_78 = arith.constant 0 : index
    %c0_79 = arith.constant 0 : index
    %122 = vector.load %arg11[%c10, %c0_78, %c0_79] : memref<17x1x256xf32, #tpu.memory_space<vmem>>, vector<1x1x256xf32>
    %123 = vector.shape_cast %122 : vector<1x1x256xf32> to vector<1x256xf32>
    %124 = arith.truncf %119 : vector<8x256xf32> to vector<8x256xbf16>
    %cst_80 = arith.constant dense<0.000000e+00> : vector<8x256xf32>
    %125 = tpu.matmul %124, %121, %cst_80 {dimension_numbers = #tpu.dot_dimension_numbers<[1], [0], [0], [1], [0, 0, 1, 1], [], []>} : vector<8x256xbf16>, vector<256x256xbf16>, vector<8x256xf32> -> vector<8x256xf32>
    %126 = vector.broadcast %123 : vector<1x256xf32> to vector<8x256xf32>
    %127 = arith.addf %125, %126 : vector<8x256xf32>
    %cst_81 = arith.constant 0.000000e+00 : f32
    %128 = vector.broadcast %cst_81 : f32 to vector<8x256xf32>
    %129 = arith.maximumf %127, %128 : vector<8x256xf32>
    %c3_i32_82 = arith.constant 3 : i32
    %130 = tpu.memref_slice %arg18[%c3_i32_82] : memref<4x!tpu.dma_semaphore, #tpu.memory_space<semaphore_mem>> -> memref<1x!tpu.dma_semaphore, #tpu.memory_space<semaphore_mem>>
    %131 = tpu.memref_squeeze %130 : memref<1x!tpu.dma_semaphore, #tpu.memory_space<semaphore_mem>> -> memref<!tpu.dma_semaphore, #tpu.memory_space<semaphore_mem>>
    tpu.wait_dma2 semaphore(%131 : memref<!tpu.dma_semaphore, #tpu.memory_space<semaphore_mem>>) src(%arg10 : memref<2x256x128xbf16, #tpu.memory_space<any>>) dst(%arg17 : memref<2x256x128xbf16, #tpu.memory_space<vmem>>)
    %c0_83 = arith.constant 0 : index
    %c0_84 = arith.constant 0 : index
    %c0_85 = arith.constant 0 : index
    %132 = vector.load %arg17[%c0_83, %c0_84, %c0_85] : memref<2x256x128xbf16, #tpu.memory_space<vmem>>, vector<1x256x128xbf16>
    %133 = vector.shape_cast %132 : vector<1x256x128xbf16> to vector<256x128xbf16>
    %c11 = arith.constant 11 : index
    %c0_86 = arith.constant 0 : index
    %c0_87 = arith.constant 0 : index
    %134 = vector.load %arg11[%c11, %c0_86, %c0_87] : memref<17x1x256xf32, #tpu.memory_space<vmem>>, vector<1x1x256xf32>
    %135 = vector.shape_cast %134 : vector<1x1x256xf32> to vector<1x256xf32>
    %136 = vector.extract_strided_slice %135 {offsets = [0, 0], sizes = [1, 128], strides = [1, 1]} : vector<1x256xf32> to vector<1x128xf32>
    %137 = arith.truncf %129 : vector<8x256xf32> to vector<8x256xbf16>
    %cst_88 = arith.constant dense<0.000000e+00> : vector<8x128xf32>
    %138 = tpu.matmul %137, %133, %cst_88 {dimension_numbers = #tpu.dot_dimension_numbers<[1], [0], [0], [1], [0, 0, 1, 1], [], []>} : vector<8x256xbf16>, vector<256x128xbf16>, vector<8x128xf32> -> vector<8x128xf32>
    %139 = vector.broadcast %136 : vector<1x128xf32> to vector<8x128xf32>
    %140 = arith.addf %138, %139 : vector<8x128xf32>
    %c0_89 = arith.constant 0 : index
    %c0_90 = arith.constant 0 : index
    %141 = vector.load %arg2[%c0_89, %c0_90] : memref<8x128xf32, #tpu.memory_space<vmem>>, vector<8x128xf32>
    %142 = arith.addf %69, %141 : vector<8x128xf32>
    %c1_91 = arith.constant 1 : index
    %c0_92 = arith.constant 0 : index
    %c0_93 = arith.constant 0 : index
    %143 = vector.load %arg15[%c1_91, %c0_92, %c0_93] : memref<2x128x256xbf16, #tpu.memory_space<vmem>>, vector<1x128x256xbf16>
    %144 = vector.shape_cast %143 : vector<1x128x256xbf16> to vector<128x256xbf16>
    %c12 = arith.constant 12 : index
    %c0_94 = arith.constant 0 : index
    %c0_95 = arith.constant 0 : index
    %145 = vector.load %arg11[%c12, %c0_94, %c0_95] : memref<17x1x256xf32, #tpu.memory_space<vmem>>, vector<1x1x256xf32>
    %146 = vector.shape_cast %145 : vector<1x1x256xf32> to vector<1x256xf32>
    %147 = arith.truncf %142 : vector<8x128xf32> to vector<8x128xbf16>
    %cst_96 = arith.constant dense<0.000000e+00> : vector<8x256xf32>
    %148 = tpu.matmul %147, %144, %cst_96 {dimension_numbers = #tpu.dot_dimension_numbers<[1], [0], [0], [1], [0, 0, 1, 1], [], []>} : vector<8x128xbf16>, vector<128x256xbf16>, vector<8x256xf32> -> vector<8x256xf32>
    %149 = vector.broadcast %146 : vector<1x256xf32> to vector<8x256xf32>
    %150 = arith.addf %148, %149 : vector<8x256xf32>
    %cst_97 = arith.constant 0.000000e+00 : f32
    %151 = vector.broadcast %cst_97 : f32 to vector<8x256xf32>
    %152 = arith.maximumf %150, %151 : vector<8x256xf32>
    %c2_98 = arith.constant 2 : index
    %c0_99 = arith.constant 0 : index
    %c0_100 = arith.constant 0 : index
    %153 = vector.load %arg16[%c2_98, %c0_99, %c0_100] : memref<5x256x256xbf16, #tpu.memory_space<vmem>>, vector<1x256x256xbf16>
    %154 = vector.shape_cast %153 : vector<1x256x256xbf16> to vector<256x256xbf16>
    %c13 = arith.constant 13 : index
    %c0_101 = arith.constant 0 : index
    %c0_102 = arith.constant 0 : index
    %155 = vector.load %arg11[%c13, %c0_101, %c0_102] : memref<17x1x256xf32, #tpu.memory_space<vmem>>, vector<1x1x256xf32>
    %156 = vector.shape_cast %155 : vector<1x1x256xf32> to vector<1x256xf32>
    %157 = arith.truncf %152 : vector<8x256xf32> to vector<8x256xbf16>
    %cst_103 = arith.constant dense<0.000000e+00> : vector<8x256xf32>
    %158 = tpu.matmul %157, %154, %cst_103 {dimension_numbers = #tpu.dot_dimension_numbers<[1], [0], [0], [1], [0, 0, 1, 1], [], []>} : vector<8x256xbf16>, vector<256x256xbf16>, vector<8x256xf32> -> vector<8x256xf32>
    %159 = vector.broadcast %156 : vector<1x256xf32> to vector<8x256xf32>
    %160 = arith.addf %158, %159 : vector<8x256xf32>
    %cst_104 = arith.constant 0.000000e+00 : f32
    %161 = vector.broadcast %cst_104 : f32 to vector<8x256xf32>
    %162 = arith.maximumf %160, %161 : vector<8x256xf32>
    %c3_105 = arith.constant 3 : index
    %c0_106 = arith.constant 0 : index
    %c0_107 = arith.constant 0 : index
    %163 = vector.load %arg16[%c3_105, %c0_106, %c0_107] : memref<5x256x256xbf16, #tpu.memory_space<vmem>>, vector<1x256x256xbf16>
    %164 = vector.shape_cast %163 : vector<1x256x256xbf16> to vector<256x256xbf16>
    %c14 = arith.constant 14 : index
    %c0_108 = arith.constant 0 : index
    %c0_109 = arith.constant 0 : index
    %165 = vector.load %arg11[%c14, %c0_108, %c0_109] : memref<17x1x256xf32, #tpu.memory_space<vmem>>, vector<1x1x256xf32>
    %166 = vector.shape_cast %165 : vector<1x1x256xf32> to vector<1x256xf32>
    %167 = arith.truncf %162 : vector<8x256xf32> to vector<8x256xbf16>
    %cst_110 = arith.constant dense<0.000000e+00> : vector<8x256xf32>
    %168 = tpu.matmul %167, %164, %cst_110 {dimension_numbers = #tpu.dot_dimension_numbers<[1], [0], [0], [1], [0, 0, 1, 1], [], []>} : vector<8x256xbf16>, vector<256x256xbf16>, vector<8x256xf32> -> vector<8x256xf32>
    %169 = vector.broadcast %166 : vector<1x256xf32> to vector<8x256xf32>
    %170 = arith.addf %168, %169 : vector<8x256xf32>
    %cst_111 = arith.constant 0.000000e+00 : f32
    %171 = vector.broadcast %cst_111 : f32 to vector<8x256xf32>
    %172 = arith.maximumf %170, %171 : vector<8x256xf32>
    %c4_112 = arith.constant 4 : index
    %c0_113 = arith.constant 0 : index
    %c0_114 = arith.constant 0 : index
    %173 = vector.load %arg16[%c4_112, %c0_113, %c0_114] : memref<5x256x256xbf16, #tpu.memory_space<vmem>>, vector<1x256x256xbf16>
    %174 = vector.shape_cast %173 : vector<1x256x256xbf16> to vector<256x256xbf16>
    %c15 = arith.constant 15 : index
    %c0_115 = arith.constant 0 : index
    %c0_116 = arith.constant 0 : index
    %175 = vector.load %arg11[%c15, %c0_115, %c0_116] : memref<17x1x256xf32, #tpu.memory_space<vmem>>, vector<1x1x256xf32>
    %176 = vector.shape_cast %175 : vector<1x1x256xf32> to vector<1x256xf32>
    %177 = arith.truncf %172 : vector<8x256xf32> to vector<8x256xbf16>
    %cst_117 = arith.constant dense<0.000000e+00> : vector<8x256xf32>
    %178 = tpu.matmul %177, %174, %cst_117 {dimension_numbers = #tpu.dot_dimension_numbers<[1], [0], [0], [1], [0, 0, 1, 1], [], []>} : vector<8x256xbf16>, vector<256x256xbf16>, vector<8x256xf32> -> vector<8x256xf32>
    %179 = vector.broadcast %176 : vector<1x256xf32> to vector<8x256xf32>
    %180 = arith.addf %178, %179 : vector<8x256xf32>
    %cst_118 = arith.constant 0.000000e+00 : f32
    %181 = vector.broadcast %cst_118 : f32 to vector<8x256xf32>
    %182 = arith.maximumf %180, %181 : vector<8x256xf32>
    %c1_119 = arith.constant 1 : index
    %c0_120 = arith.constant 0 : index
    %c0_121 = arith.constant 0 : index
    %183 = vector.load %arg17[%c1_119, %c0_120, %c0_121] : memref<2x256x128xbf16, #tpu.memory_space<vmem>>, vector<1x256x128xbf16>
    %184 = vector.shape_cast %183 : vector<1x256x128xbf16> to vector<256x128xbf16>
    %c16 = arith.constant 16 : index
    %c0_122 = arith.constant 0 : index
    %c0_123 = arith.constant 0 : index
    %185 = vector.load %arg11[%c16, %c0_122, %c0_123] : memref<17x1x256xf32, #tpu.memory_space<vmem>>, vector<1x1x256xf32>
    %186 = vector.shape_cast %185 : vector<1x1x256xf32> to vector<1x256xf32>
    %187 = vector.extract_strided_slice %186 {offsets = [0, 0], sizes = [1, 128], strides = [1, 1]} : vector<1x256xf32> to vector<1x128xf32>
    %188 = arith.truncf %182 : vector<8x256xf32> to vector<8x256xbf16>
    %cst_124 = arith.constant dense<0.000000e+00> : vector<8x128xf32>
    %189 = tpu.matmul %188, %184, %cst_124 {dimension_numbers = #tpu.dot_dimension_numbers<[1], [0], [0], [1], [0, 0, 1, 1], [], []>} : vector<8x256xbf16>, vector<256x128xbf16>, vector<8x128xf32> -> vector<8x128xf32>
    %190 = vector.broadcast %187 : vector<1x128xf32> to vector<8x128xf32>
    %191 = arith.addf %189, %190 : vector<8x128xf32>
    %c0_125 = arith.constant 0 : index
    %c0_126 = arith.constant 0 : index
    %192 = vector.load %arg12[%c0_125, %c0_126] : memref<8x128xf32, #tpu.memory_space<vmem>>, vector<8x128xf32>
    tpu.vector_store %arg12[%c0_125, %c0_126], %140 {strides = array<i32>} : memref<8x128xf32, #tpu.memory_space<vmem>>, vector<8x128xf32>,
    %c0_127 = arith.constant 0 : index
    %c0_128 = arith.constant 0 : index
    %193 = vector.load %arg13[%c0_127, %c0_128] : memref<8x128xf32, #tpu.memory_space<vmem>>, vector<8x128xf32>
    tpu.vector_store %arg13[%c0_127, %c0_128], %191 {strides = array<i32>} : memref<8x128xf32, #tpu.memory_space<vmem>>, vector<8x128xf32>,
    return
  }
}

</mosaic_0001>

<bundles_post_ra>
// kernel: one_dim_model_forward.1
= control target key start
LH: loop header
LB: loop body
LE: loop exit
PB: predicated region body
PF: predicated region fallthrough
CT: control target
= control target key end

     0   :  { %19 = vsyncpa [#allocation8], 0  ;;  %s4903_s0 = inlined_call_operand.vmem [shape: f32[8,128], index: 0, kind: input, shape index: {}]   ;;  %s4904_s1 = inlined_call_operand.vmem [shape: f32[8,128], index: 1, kind: input, shape index: {}]   ;;  %s4905_s2 = inlined_call_operand.vmem [shape: f32[8,128], index: 2, kind: input, shape index: {}]   ;;  %s4906_s3 = inlined_call_operand.hbm [shape: bf16[1,128,256], index: 3, kind: input, shape index: {}]   ;;  %s4907_s4 = inlined_call_operand.hbm [shape: bf16[2,256,256], index: 4, kind: input, shape index: {}]   ;;  %s4908_s5 = inlined_call_operand.hbm [shape: bf16[1,256,128], index: 5, kind: input, shape index: {}]   ;;  %s4909_s6 = inlined_call_operand.hbm [shape: bf16[2,128,128], index: 6, kind: input, shape index: {}]   ;;  %s4910_s7 = inlined_call_operand.hbm [shape: bf16[2,128,128], index: 7, kind: input, shape index: {}]   ;;  %s4911_s8 = inlined_call_operand.hbm [shape: bf16[2,128,256], index: 8, kind: input, shape index: {}]   ;;  %s4912_s9 = inlined_call_operand.hbm [shape: bf16[5,256,256], index: 9, kind: input, shape index: {}]   ;;  %s4913_s10 = inlined_call_operand.hbm [shape: bf16[2,256,128], index: 10, kind: input, shape index: {}]   ;;  %s4914_s11 = inlined_call_operand.vmem [shape: f32[17,1,256], index: 11, kind: input, shape index: {}]   ;;  %s4915_s12 = inlined_call_operand.vmem [shape: f32[8,128], index: 12, kind: output, shape index: {0}]   ;;  %s4916_s13 = inlined_call_operand.vmem [shape: f32[8,128], index: 13, kind: output, shape index: {1}]  }
   0x1   :  { %20 = vsyncpa [#allocation10], 0 }
   0x2   :  { %21 = vsyncpa [#allocation13], 0  ;;  %s4638_s25 = smov [#allocation9]   ;;  %s4639_s27 = smov [#allocation7]  }
   0x3   :  { %s45_s26 = sshll.u32 %s4638_s25, 4  ;;  %s33_s28 = sshll.u32 %s4639_s27, 4  ;;  %s46_s26 = int_to_ptr.vmem [resolvable:$true] %s45_s26  ;;  %s34_s28 = int_to_ptr.vmem [resolvable:$true] %s33_s28 }
   0x4   :  { %s4472_s29 = scalar_lea.vmem %s46_s26, 8192  ;;  %p4477_p1 = scmp.lt.s32.totalorder %s46_s26, %s46_s26 }
   0x5   :  { %p4473_p0 = scmp.ne.s32.totalorder %s46_s26, %s4472_s29  ;;  %p4478_p2 = scmp.lt.s32.totalorder %s4472_s29, %s4472_s29 }
   0x7   :  { %p4479_p3 = por %p4478_p2, %p4477_p1 }
   0x9   :  { %p4480_p4 = pnand %p4479_p3, %p4473_p0 }
   0xb   :  { %4483 = shalt.err (!%p4480_p4)
}
   0xc   :  { %s4640_s30 = smov 128   ;;  %s4641_s14 = smov 8  }
   0xd   :  { %51 = dma.hbm_to_vmem [thread:$0]  %s4907_s4, 8192, %s46_s26, [#allocation10], %s4640_s30, %s4640_s30, %s4641_s14  }
   0xe   :  { %s4492_s17 = scalar_lea.vmem %s34_s28, 2048  ;;  %p4497_p6 = scmp.lt.s32.totalorder %s34_s28, %s34_s28 }
   0xf   :  { %p4493_p5 = scmp.ne.s32.totalorder %s34_s28, %s4492_s17  ;;  %p4498_p7 = scmp.lt.s32.totalorder %s4492_s17, %s4492_s17 }
  0x11   :  { %p4499_p8 = por %p4498_p7, %p4497_p6 }
  0x13   :  { %p4500_p9 = pnand %p4499_p8, %p4493_p5 }
  0x15   :  { %4503 = shalt.err (!%p4500_p9)
}
  0x16   :  { %39 = dma.hbm_to_vmem [thread:$0]  %s4906_s3, 2048, %s34_s28, [#allocation8], %s4640_s30, %s4640_s30, %s4641_s14  }
  0x17   :  { %s4642_s20 = smov [#allocation11]  }
  0x18   :  { %s57_s21 = sshll.u32 %s4642_s20, 4  ;;  %s58_s21 = int_to_ptr.vmem [resolvable:$true] %s57_s21 }
  0x19   :  { %s4512_s22 = scalar_lea.vmem %s58_s21, 2048  ;;  %p4517_p11 = scmp.lt.s32.totalorder %s58_s21, %s58_s21 }
  0x1a   :  { %p4513_p10 = scmp.ne.s32.totalorder %s58_s21, %s4512_s22  ;;  %p4518_p12 = scmp.lt.s32.totalorder %s4512_s22, %s4512_s22 }
  0x1c   :  { %p4519_p13 = por %p4518_p12, %p4517_p11 }
  0x1e   :  { %p4520_p0 = pnand %p4519_p13, %p4513_p10 }
  0x20   :  { %4523 = shalt.err (!%p4520_p0)
}
  0x21   :  { %s4643_s4 = smov 64   ;;  %s4644_s23 = smov 4  }
  0x22   :  { %63 = dma.hbm_to_vmem [thread:$0]  %s4908_s5, 2048, %s58_s21, [#allocation10], %s4643_s4, %s4643_s4, %s4644_s23  }
  0x23   :  { %s4645_s26 = smov [#allocation12]  }
  0x24   :  { %s69_s27 = sshll.u32 %s4645_s26, 4  ;;  %s70_s27 = int_to_ptr.vmem [resolvable:$true] %s69_s27 }
  0x25   :  { %s4532_s3 = scalar_lea.vmem %s70_s27, 2048  ;;  %p4537_p2 = scmp.lt.s32.totalorder %s70_s27, %s70_s27 }
  0x26   :  { %p4533_p1 = scmp.ne.s32.totalorder %s70_s27, %s4532_s3  ;;  %p4538_p3 = scmp.lt.s32.totalorder %s4532_s3, %s4532_s3 }
  0x28   :  { %p4539_p4 = por %p4538_p3, %p4537_p2 }
  0x2a   :  { %p4540_p5 = pnand %p4539_p4, %p4533_p1 }
  0x2c   :  { %4543 = shalt.err (!%p4540_p5)
}
  0x2d   :  { %75 = dma.hbm_to_vmem [thread:$0]  %s4909_s6, 2048, %s70_s27, [#allocation13], %s4643_s4, %s4643_s4, %s4644_s23  }
  0x2e   :  { %4624 = dma.done.wait [#allocation8], 2048  }
  0x2f   :  { %4625 = vsyncadd [#allocation8], 4294965248 }
  0x30   :  { %4626 = dma.done.wait [#allocation10], 10240  }
  0x31   :  { %4627 = vsyncadd [#allocation10], 4294957056 }
  0x32   :  { %4628 = dma.done.wait [#allocation13], 2048  }
  0x33   :  { %4629 = vsyncadd [#allocation13], 4294965248  ;;  %v4646_v0 = vmov 0   ;;  %v3976_v1 = vld [vmem:[#allocation7 + $0x74] ss:$8 sps:$4 sm:$0xff]   ;;  %v138_v26 = vld [vmem:[%s4903_s0] sm:$0xff] }
  0x34   :  { %280 = vmatprep.mubr.bf16.mxu0 %v4646_v0  ;;  %v3978_v2 = vld [vmem:[#allocation7 + $0x70] ss:$8 sps:$4 sm:$0xff]   ;;  %248 = vmatprep.subr.bf16.mxu0 %v3976_v1  ;;  %v3979_v3 = vld [vmem:[#allocation7 + $0x64] ss:$8 sps:$4 sm:$0xff]   ;;  %v3981_v4 = vld [vmem:[#allocation7 + $0x60] ss:$8 sps:$4 sm:$0xff]   ;;  %v156_v31 = vpack.c.bf16 %v138_v26, %v138_v26 }
  0x35   :  { %249 = vmatpush1.bf16.msra.mxu0 %v3978_v2  ;;  %v3982_v5 = vld [vmem:[#allocation7 + $0x54] ss:$8 sps:$4 sm:$0xff]   ;;  %v3984_v6 = vld [vmem:[#allocation7 + $0x50] ss:$8 sps:$4 sm:$0xff]   ;;  %v3985_v7 = vld [vmem:[#allocation7 + $0x44] ss:$8 sps:$4 sm:$0xff]  }
  0x36   :  { %250 = vmatprep.subr.bf16.mxu0 %v3979_v3  ;;  %v3987_v8 = vld [vmem:[#allocation7 + $0x40] ss:$8 sps:$4 sm:$0xff]   ;;  %v3988_v9 = vld [vmem:[#allocation7 + $0x34] ss:$8 sps:$4 sm:$0xff]   ;;  %v4002_v11 = vld [vmem:[#allocation9 + $0x70] ss:$8 sps:$4 sm:$0xff]  }
  0x37   :  { %v4000_v10 = vld [vmem:[#allocation9 + $0x74] ss:$8 sps:$4 sm:$0xff]   ;;  %v4003_v12 = vld [vmem:[#allocation9 + $0x64] ss:$8 sps:$4 sm:$0xff]   ;;  %v3990_v13 = vld [vmem:[#allocation7 + $0x30] ss:$8 sps:$4 sm:$0xff]  }
  0x38   :  { %498 = vmatprep.subr.bf16.mxu1 %v4000_v10  ;;  %v4005_v14 = vld [vmem:[#allocation9 + $0x60] ss:$8 sps:$4 sm:$0xff]   ;;  %v4006_v15 = vld [vmem:[#allocation9 + $0x54] ss:$8 sps:$4 sm:$0xff]   ;;  %v3991_v16 = vld [vmem:[#allocation7 + $0x24] ss:$8 sps:$4 sm:$0xff]  }
  0x39   :  { %251 = vmatpush1.bf16.msra.mxu0 %v3981_v4  ;;  %499 = vmatpush1.bf16.msra.mxu1 %v4002_v11  ;;  %v3993_v17 = vld [vmem:[#allocation7 + $0x20] ss:$8 sps:$4 sm:$0xff]   ;;  %v4008_v18 = vld [vmem:[#allocation9 + $0x50] ss:$8 sps:$4 sm:$0xff]   ;;  %v4009_v19 = vld [vmem:[#allocation9 + $0x44] ss:$8 sps:$4 sm:$0xff]  }
  0x3a   :  { %252 = vmatprep.subr.bf16.mxu0 %v3982_v5  ;;  %500 = vmatprep.subr.bf16.mxu1 %v4003_v12  ;;  %v3994_v20 = vld [vmem:[#allocation7 + $0x14] ss:$8 sps:$4 sm:$0xff]   ;;  %v3996_v21 = vld [vmem:[#allocation7 + $0x10] ss:$8 sps:$4 sm:$0xff]   ;;  %v4011_v22 = vld [vmem:[#allocation9 + $0x40] ss:$8 sps:$4 sm:$0xff]  }
  0x3b   :  { %v4012_v23 = vld [vmem:[#allocation9 + $0x34] ss:$8 sps:$4 sm:$0xff]   ;;  %v3997_v24 = vld [vmem:[#allocation7 + $0x4] ss:$8 sps:$4 sm:$0xff]   ;;  %v3999_v25 = vld [vmem:[#allocation7] ss:$8 sps:$4 sm:$0xff]  }
  0x3c   :  { %v4014_v27 = vld [vmem:[#allocation9 + $0x30] ss:$8 sps:$4 sm:$0xff]   ;;  %v4015_v28 = vld [vmem:[#allocation9 + $0x24] ss:$8 sps:$4 sm:$0xff]   ;;  %v4017_v29 = vld [vmem:[#allocation9 + $0x20] ss:$8 sps:$4 sm:$0xff]  }
  0x3d   :  { %253 = vmatpush1.bf16.msra.mxu0 %v3984_v6  ;;  %501 = vmatpush1.bf16.msra.mxu1 %v4005_v14  ;;  %v4018_v30 = vld [vmem:[#allocation9 + $0x14] ss:$8 sps:$4 sm:$0xff]   ;;  %v4020_v32 = vld [vmem:[#allocation9 + $0x10] ss:$8 sps:$4 sm:$0xff]   ;;  %v4021_v33 = vld [vmem:[#allocation9 + $0x4] ss:$8 sps:$4 sm:$0xff]  }
  0x3e   :  { %254 = vmatprep.subr.bf16.mxu0 %v3985_v7  ;;  %502 = vmatprep.subr.bf16.mxu1 %v4006_v15  ;;  %v4023_v34 = vld [vmem:[#allocation9] ss:$8 sps:$4 sm:$0xff]   ;;  %v4024_v35 = vld [vmem:[#allocation9 + $0xf4] ss:$8 sps:$4 sm:$0xff]   ;;  %v4026_v36 = vld [vmem:[#allocation9 + $0xf0] ss:$8 sps:$4 sm:$0xff]  }
  0x3f   :  { %v4027_v37 = vld [vmem:[#allocation9 + $0xe4] ss:$8 sps:$4 sm:$0xff]   ;;  %v4029_v38 = vld [vmem:[#allocation9 + $0xe0] ss:$8 sps:$4 sm:$0xff]   ;;  %v4030_v39 = vld [vmem:[#allocation9 + $0xd4] ss:$8 sps:$4 sm:$0xff]  }
  0x40   :  { %v4032_v40 = vld [vmem:[#allocation9 + $0xd0] ss:$8 sps:$4 sm:$0xff]   ;;  %v4033_v41 = vld [vmem:[#allocation9 + $0xc4] ss:$8 sps:$4 sm:$0xff]   ;;  %v4035_v42 = vld [vmem:[#allocation9 + $0xc0] ss:$8 sps:$4 sm:$0xff]  }
  0x41   :  { %255 = vmatpush1.bf16.msra.mxu0 %v3987_v8  ;;  %503 = vmatpush1.bf16.msra.mxu1 %v4008_v18  ;;  %v4036_v43 = vld [vmem:[#allocation9 + $0xb4] ss:$8 sps:$4 sm:$0xff]   ;;  %v4038_v44 = vld [vmem:[#allocation9 + $0xb0] ss:$8 sps:$4 sm:$0xff]   ;;  %v4039_v45 = vld [vmem:[#allocation9 + $0xa4] ss:$8 sps:$4 sm:$0xff]  }
  0x42   :  { %256 = vmatprep.subr.bf16.mxu0 %v3988_v9  ;;  %504 = vmatprep.subr.bf16.mxu1 %v4009_v19  ;;  %v4041_v46 = vld [vmem:[#allocation9 + $0xa0] ss:$8 sps:$4 sm:$0xff]   ;;  %v4042_v47 = vld [vmem:[#allocation9 + $0x94] ss:$8 sps:$4 sm:$0xff]   ;;  %v4044_v48 = vld [vmem:[#allocation9 + $0x90] ss:$8 sps:$4 sm:$0xff]  }
  0x43   :  { %v4045_v49 = vld [vmem:[#allocation9 + $0x84] ss:$8 sps:$4 sm:$0xff]   ;;  %v4047_v50 = vld [vmem:[#allocation9 + $0x80] ss:$8 sps:$4 sm:$0xff]   ;;  %v4048_v51 = vld [vmem:[#allocation9 + $0x170] ss:$8 sps:$4 sm:$0xff]  }
  0x44   :  { %v4050_v52 = vld [vmem:[#allocation9 + $0x174] ss:$8 sps:$4 sm:$0xff]   ;;  %v4053_v53 = vld [vmem:[#allocation9 + $0x164] ss:$8 sps:$4 sm:$0xff]   ;;  %v4051_v54 = vld [vmem:[#allocation9 + $0x160] ss:$8 sps:$4 sm:$0xff]  }
  0x45   :  { %257 = vmatpush1.bf16.msra.mxu0 %v3990_v13  ;;  %505 = vmatpush1.bf16.msra.mxu1 %v4011_v22  ;;  %v4056_v55 = vld [vmem:[#allocation9 + $0x154] ss:$8 sps:$4 sm:$0xff]   ;;  %v4054_v56 = vld [vmem:[#allocation9 + $0x150] ss:$8 sps:$4 sm:$0xff]   ;;  %v4059_v57 = vld [vmem:[#allocation9 + $0x144] ss:$8 sps:$4 sm:$0xff]  }
  0x46   :  { %258 = vmatprep.subr.bf16.mxu0 %v3991_v16  ;;  %506 = vmatprep.subr.bf16.mxu1 %v4012_v23  ;;  %v4057_v58 = vld [vmem:[#allocation9 + $0x140] ss:$8 sps:$4 sm:$0xff]   ;;  %v4062_v59 = vld [vmem:[#allocation9 + $0x134] ss:$8 sps:$4 sm:$0xff]   ;;  %v4060_v60 = vld [vmem:[#allocation9 + $0x130] ss:$8 sps:$4 sm:$0xff]   ;;  %v158_v16 = vlaneseq }
  0x47   :  { %v4065_v61 = vld [vmem:[#allocation9 + $0x124] ss:$8 sps:$4 sm:$0xff]   ;;  %v4063_v62 = vld [vmem:[#allocation9 + $0x120] ss:$8 sps:$4 sm:$0xff]   ;;  %v4068_v63 = vld [vmem:[#allocation9 + $0x114] ss:$8 sps:$4 sm:$0xff]  }
  0x48   :  { %v4066_v1 = vld [vmem:[#allocation9 + $0x110] ss:$8 sps:$4 sm:$0xff]   ;;  %v4071_v2 = vld [vmem:[#allocation9 + $0x104] ss:$8 sps:$4 sm:$0xff]   ;;  %v4069_v3 = vld [vmem:[#allocation9 + $0x100] ss:$8 sps:$4 sm:$0xff]  }
  0x49   :  { %259 = vmatpush1.bf16.msra.mxu0 %v3993_v17  ;;  %507 = vmatpush1.bf16.msra.mxu1 %v4014_v27  ;;  %v4074_v4 = vld [vmem:[#allocation9 + $0x1f4] ss:$8 sps:$4 sm:$0xff]   ;;  %v4072_v5 = vld [vmem:[#allocation9 + $0x1f0] ss:$8 sps:$4 sm:$0xff]   ;;  %v4077_v6 = vld [vmem:[#allocation9 + $0x1e4] ss:$8 sps:$4 sm:$0xff]  }
  0x4a   :  { %260 = vmatprep.subr.bf16.mxu0 %v3994_v20  ;;  %508 = vmatprep.subr.bf16.mxu1 %v4015_v28  ;;  %v4075_v7 = vld [vmem:[#allocation9 + $0x1e0] ss:$8 sps:$4 sm:$0xff]   ;;  %v4080_v8 = vld [vmem:[#allocation9 + $0x1d4] ss:$8 sps:$4 sm:$0xff]   ;;  %v4078_v9 = vld [vmem:[#allocation9 + $0x1d0] ss:$8 sps:$4 sm:$0xff]  }
  0x4b   :  { %v4083_v10 = vld [vmem:[#allocation9 + $0x1c4] ss:$8 sps:$4 sm:$0xff]   ;;  %v4081_v11 = vld [vmem:[#allocation9 + $0x1c0] ss:$8 sps:$4 sm:$0xff]   ;;  %v4086_v12 = vld [vmem:[#allocation9 + $0x1b4] ss:$8 sps:$4 sm:$0xff]  }
  0x4c   :  { %v4084_v13 = vld [vmem:[#allocation9 + $0x1b0] ss:$8 sps:$4 sm:$0xff]   ;;  %v4089_v14 = vld [vmem:[#allocation9 + $0x1a4] ss:$8 sps:$4 sm:$0xff]   ;;  %v4087_v15 = vld [vmem:[#allocation9 + $0x1a0] ss:$8 sps:$4 sm:$0xff]  }
  0x4d   :  { %261 = vmatpush1.bf16.msra.mxu0 %v3996_v21  ;;  %509 = vmatpush1.bf16.msra.mxu1 %v4017_v29  ;;  %v159_v17 = vshrl.u32 %v158_v16, 7  ;;  %v155_v19 = vld [vmem:[%s4914_s11] sm:$0x3]  ;;  %vm4648_vm0 = vmmov 0   ;;  %s4649_s22 = smov [#allocation2]   ;;  %s4650_s23 = smov [#allocation3]  }
  0x4e   :  { %262 = vmatprep.subr.bf16.mxu0 %v3997_v24  ;;  %510 = vmatprep.subr.bf16.mxu1 %v4018_v30  ;;  %s98_s4 = sshll.u32 %s4649_s22, 4  ;;  %s110_s24 = sshll.u32 %s4650_s23, 4  ;;  %s99_s4 = int_to_ptr.vmem [resolvable:$true] %s98_s4  ;;  %s111_s24 = int_to_ptr.vmem [resolvable:$true] %s110_s24 }
  0x4f   :  { %v4739_v18 = vsub.s32 0, %v159_v17  ;;  %v4744_v20 = vsub.s32 1, %v159_v17  ;;  %s4552_s25 = scalar_lea.vmem %s99_s4, 2048  ;;  %p4557_p7 = scmp.lt.s32.totalorder %s99_s4, %s99_s4 }
  0x50   :  { %p4553_p6 = scmp.ne.s32.totalorder %s99_s4, %s4552_s25  ;;  %p4558_p8 = scmp.lt.s32.totalorder %s4552_s25, %s4552_s25 }
  0x51   :  { %263 = vmatpush1.bf16.msra.mxu0 %v3999_v25  ;;  %511 = vmatpush1.bf16.msra.mxu1 %v4020_v32  ;;  %v161_v21 = vrot.slane %v155_v19, %v4739_v18  ;;  %v165_v22 = vrot.slane %v155_v19, %v4744_v20 }
  0x52   :  { %512 = vmatprep.subr.bf16.mxu1 %v4021_v33  ;;  %749 = vmatprep.subr.bf16.mxu0 %v4050_v52  ;;  %v4092_v33 = vld [vmem:[#allocation9 + $0x194] ss:$8 sps:$4 sm:$0xff]   ;;  %p4559_p9 = por %p4558_p8, %p4557_p7 }
  0x54   :  { %281 = vmatmul.mubr.bf16.vlgmr.msra.gmra.mxu0 %v156_v31  ;;  %p4560_p10 = pnand %p4559_p9, %p4553_p6 }
  0x55   :  { %513 = vmatpush1.bf16.msra.mxu1 %v4023_v34  ;;  %750 = vmatpush1.bf16.msra.mxu0 %v4048_v51  ;;  %v4090_v34 = vld [vmem:[#allocation9 + $0x190] ss:$8 sps:$4 sm:$0xff]  }
  0x56   :  { %514 = vmatprep.subr.bf16.mxu1 %v4024_v35  ;;  %751 = vmatprep.subr.bf16.mxu0 %v4053_v53  ;;  %v4095_v35 = vld [vmem:[#allocation9 + $0x184] ss:$8 sps:$4 sm:$0xff]  }
  0x59   :  { %515 = vmatpush2.bf16.msra.mxu1 %v4026_v36  ;;  %752 = vmatpush1.bf16.msra.mxu0 %v4051_v54  ;;  %v4093_v36 = vld [vmem:[#allocation9 + $0x180] ss:$8 sps:$4 sm:$0xff]  }
  0x5a   :  { %516 = vmatprep.subr.bf16.mxu1 %v4027_v37  ;;  %753 = vmatprep.subr.bf16.mxu0 %v4056_v55  ;;  %v4096_v37 = vld [vmem:[#allocation11 + $0x78] sm:$0xff]  }
  0x5d   :  { %517 = vmatpush2.bf16.msra.mxu1 %v4029_v38  ;;  %754 = vmatpush1.bf16.msra.mxu0 %v4054_v56  ;;  %v4097_v38 = vld [vmem:[#allocation11 + $0x38] sm:$0xff]  }
  0x5e   :  { %518 = vmatprep.subr.bf16.mxu1 %v4030_v39  ;;  %755 = vmatprep.subr.bf16.mxu0 %v4059_v57  ;;  %v4098_v39 = vld [vmem:[#allocation11 + $0x70] sm:$0xff]  }
  0x61   :  { %519 = vmatpush2.bf16.msra.mxu1 %v4032_v40  ;;  %756 = vmatpush1.bf16.msra.mxu0 %v4057_v58  ;;  %v4099_v40 = vld [vmem:[#allocation11 + $0x30] sm:$0xff]  }
  0x62   :  { %520 = vmatprep.subr.bf16.mxu1 %v4033_v41  ;;  %757 = vmatprep.subr.bf16.mxu0 %v4062_v59  ;;  %v4100_v41 = vld [vmem:[#allocation11 + $0x68] sm:$0xff]  }
  0x65   :  { %521 = vmatpush2.bf16.msra.mxu1 %v4035_v42  ;;  %758 = vmatpush1.bf16.msra.mxu0 %v4060_v60  ;;  %v4101_v42 = vld [vmem:[#allocation11 + $0x28] sm:$0xff]  }
  0x66   :  { %522 = vmatprep.subr.bf16.mxu1 %v4036_v43  ;;  %759 = vmatprep.subr.bf16.mxu0 %v4065_v61  ;;  %v4102_v43 = vld [vmem:[#allocation11 + $0x60] sm:$0xff]  }
  0x69   :  { %523 = vmatpush2.bf16.msra.mxu1 %v4038_v44  ;;  %760 = vmatpush1.bf16.msra.mxu0 %v4063_v62  ;;  %v4103_v44 = vld [vmem:[#allocation11 + $0x20] sm:$0xff]   ;;  %v4108_v62 = vld [vmem:[#allocation11 + $0x48] sm:$0xff]  }
  0x6a   :  { %524 = vmatprep.subr.bf16.mxu1 %v4039_v45  ;;  %761 = vmatprep.subr.bf16.mxu0 %v4068_v63  ;;  %v4104_v45 = vld [vmem:[#allocation11 + $0x58] sm:$0xff]   ;;  %v4109_v63 = vld [vmem:[#allocation11 + $0x8] sm:$0xff]  }
  0x6d   :  { %525 = vmatpush2.bf16.msra.mxu1 %v4041_v46  ;;  %762 = vmatpush1.bf16.msra.mxu0 %v4066_v1  ;;  %v4105_v46 = vld [vmem:[#allocation11 + $0x18] sm:$0xff]   ;;  %v4110_v1 = vld [vmem:[#allocation11 + $0x40] sm:$0xff]  }
  0x6e   :  { %526 = vmatprep.subr.bf16.mxu1 %v4042_v47  ;;  %763 = vmatprep.subr.bf16.mxu0 %v4071_v2  ;;  %v4106_v47 = vld [vmem:[#allocation11 + $0x50] sm:$0xff]   ;;  %v4111_v2 = vld [vmem:[#allocation11] sm:$0xff]  }
  0x71   :  { %527 = vmatpush2.bf16.msra.mxu1 %v4044_v48  ;;  %764 = vmatpush1.bf16.msra.mxu0 %v4069_v3  ;;  %v4107_v48 = vld [vmem:[#allocation11 + $0x10] sm:$0xff]   ;;  %v4112_v3 = vld [vmem:[#allocation12 + $0x38] sm:$0xff]  }
  0x72   :  { %528 = vmatprep.subr.bf16.mxu1 %v4045_v49  ;;  %765 = vmatprep.subr.bf16.mxu0 %v4074_v4  ;;  %v3423_v49 = vld [vmem:[%s4914_s11 + $0x2] sm:$0x3]  ;;  %v4647_v4 = vmov 0.0  }
  0x73   :  { %v335_v51 = vrot.slane %v3423_v49, %v4744_v20 }
  0x75   :  { %529 = vmatpush2.bf16.msra.mxu1 %v4047_v50  ;;  %766 = vmatpush2.bf16.msra.mxu0 %v4072_v5  ;;  %v331_v50 = vrot.slane %v3423_v49, %v4739_v18  ;;  %v4113_v5 = vld [vmem:[#allocation12 + $0x30] sm:$0xff]  }
  0x76   :  { %767 = vmatprep.subr.bf16.mxu0 %v4077_v6  ;;  %3779 = vmatprep.subr.bf16.mxu1 %v4096_v37  ;;  %v4114_v6 = vld [vmem:[#allocation12 + $0x28] sm:$0xff]  }
  0x79   :  { %768 = vmatpush2.bf16.msra.mxu0 %v4075_v7  ;;  %v4115_v7 = vld [vmem:[#allocation12 + $0x20] sm:$0xff]  }
  0x7a   :  { %769 = vmatprep.subr.bf16.mxu0 %v4080_v8  ;;  %v4116_v8 = vld [vmem:[#allocation12 + $0x18] sm:$0xff]  }
  0x7d   :  { %770 = vmatpush2.bf16.msra.mxu0 %v4078_v9  ;;  %v3456_v9 = vld [vmem:[%s4914_s11 + $0x4] sm:$0x3] }
  0x7e   :  { %771 = vmatprep.subr.bf16.mxu0 %v4083_v10  ;;  %v582_v10 = vrot.slane %v3456_v9, %v4739_v18 }
  0x81   :  { %772 = vmatpush2.bf16.msra.mxu0 %v4081_v11  ;;  %v586_v11 = vrot.slane %v3456_v9, %v4744_v20 }
  0x82   :  { %773 = vmatprep.subr.bf16.mxu0 %v4086_v12 }
  0x85   :  { %774 = vmatpush2.bf16.msra.mxu0 %v4084_v13 }
  0x86   :  { %775 = vmatprep.subr.bf16.mxu0 %v4089_v14 }
  0x89   :  { %776 = vmatpush2.bf16.msra.mxu0 %v4087_v15 }
  0x8a   :  { %777 = vmatprep.subr.bf16.mxu0 %v4092_v33  ;;  %v3489_v33 = vld [vmem:[%s4914_s11 + $0x6] sm:$0x3] }
  0x8d   :  { %778 = vmatpush2.bf16.msra.mxu0 %v4090_v34 }
  0x8e   :  { %779 = vmatprep.subr.bf16.mxu0 %v4095_v35  ;;  %v832_v35 = vrot.slane %v3489_v33, %v4739_v18 }
  0x91   :  { %780 = vmatpush2.bf16.msra.mxu0 %v4093_v36 }
  0x92   :  { %3881 = vmatprep.subr.bf16.mxu0 %v4647_v4 }
 0x114   :  { %v282_v23 = vpop.f32.mrf.mxu0 }
 0x115   :  { %v283_v24 = vadd.f32 %v282_v23, %v161_v21 }
 0x116   :  { %v284_v25 = vpop.f32.mrf.mxu0 }
 0x117   :  { %v285_v26 = vadd.f32 %v284_v25, %v165_v22  ;;  %v289_v27 = vmax.f32 %v283_v24, 0.0  ;;  %v4117_v24 = vld [vmem:[#allocation12 + $0x10] sm:$0xff]   ;;  %v4118_v25 = vld [vmem:[#allocation12 + $0x8] sm:$0xff]  }
 0x118   :  { %v286_v28 = vpop.f32.mrf.mxu0 }
 0x119   :  { %v290_v29 = vmax.f32 %v285_v26, 0.0  ;;  %v325_v32 = vpack.c.bf16 %v289_v27, %v289_v27  ;;  %v4119_v26 = vld [vmem:[#allocation12] sm:$0xff]   ;;  %v4120_v27 = vld [vmem:[#allocation12 + $0x78] sm:$0xff]   ;;  %v4121_v28 = vld [vmem:[#allocation12 + $0x70] sm:$0xff]  }
 0x11a   :  { %v287_v30 = vpop.f32.mrf.mxu0 }
 0x11b   :  { %v326_v31 = vpack.c.bf16 %v290_v29, %v290_v29  ;;  %v4122_v29 = vld [vmem:[#allocation12 + $0x68] sm:$0xff]   ;;  %v4123_v30 = vld [vmem:[#allocation12 + $0x60] sm:$0xff]  }
 0x11d   :  { %530 = vmatprep.mubr.bf16.mxu1 %v326_v31  ;;  %v4124_v31 = vld [vmem:[#allocation12 + $0x58] sm:$0xff]  }
 0x11e   :  { %531 = vmatmul.mubr.bf16.vlgmr.msra.gmra.mxu1 %v325_v32  ;;  %v4125_v32 = vld [vmem:[#allocation12 + $0x50] sm:$0xff]  }
 0x11f   :  { %3780 = vmatpush3.bf16.msra.mxu1 %v4097_v38 }
 0x120   :  { %3781 = vmatprep.subr.bf16.mxu1 %v4098_v39 }
 0x123   :  { %3782 = vmatpush3.bf16.msra.mxu1 %v4099_v40 }
 0x124   :  { %3783 = vmatprep.subr.bf16.mxu1 %v4100_v41 }
 0x127   :  { %3784 = vmatpush3.bf16.msra.mxu1 %v4101_v42 }
 0x128   :  { %3785 = vmatprep.subr.bf16.mxu1 %v4102_v43  ;;  %v4126_v43 = vld [vmem:[#allocation12 + $0x48] sm:$0xff]  }
 0x12b   :  { %3786 = vmatpush3.bf16.msra.mxu1 %v4103_v44  ;;  %v4127_v44 = vld [vmem:[#allocation12 + $0x40] sm:$0xff]  }
 0x12c   :  { %3787 = vmatprep.subr.bf16.mxu1 %v4104_v45  ;;  %v3506_v45 = vld [vmem:[%s4914_s11 + $0x8] sm:$0x3] }
 0x12f   :  { %3788 = vmatpush3.bf16.msra.mxu1 %v4105_v46  ;;  %v994_v46 = vrot.slane %v3506_v45, %v4739_v18 }
 0x130   :  { %3789 = vmatprep.subr.bf16.mxu1 %v4106_v47 }
 0x133   :  { %3790 = vmatpush3.bf16.msra.mxu1 %v4107_v48 }
 0x134   :  { %3791 = vmatprep.subr.bf16.mxu1 %v4108_v62 }
 0x137   :  { %3792 = vmatpush3.bf16.msra.mxu1 %v4109_v63 }
 0x138   :  { %3793 = vmatprep.subr.bf16.mxu1 %v4110_v1 }
 0x13b   :  { %3794 = vmatpush3.bf16.msra.mxu1 %v4111_v2 }
 0x13c   :  { %3901 = vmatprep.subr.bf16.mxu1 %v4647_v4 }
 0x1de   :  { %v532_v52 = vpop.f32.mrf.mxu1 }
 0x1df   :  { %v533_v53 = vadd.f32 %v532_v52, %v331_v50 }
 0x1e0   :  { %v534_v54 = vpop.f32.mrf.mxu1 }
 0x1e1   :  { %v535_v55 = vadd.f32 %v534_v54, %v335_v51  ;;  %v539_v56 = vmax.f32 %v533_v53, 0.0 }
 0x1e2   :  { %v536_v57 = vpop.f32.mrf.mxu1 }
 0x1e3   :  { %v540_v58 = vmax.f32 %v535_v55, 0.0  ;;  %v576_v61 = vpack.c.bf16 %v539_v56, %v539_v56 }
 0x1e4   :  { %v537_v59 = vpop.f32.mrf.mxu1 }
 0x1e5   :  { %v577_v60 = vpack.c.bf16 %v540_v58, %v540_v58 }
 0x1e7   :  { %781 = vmatprep.mubr.bf16.mxu0 %v577_v60 }
 0x1e8   :  { %782 = vmatmul.mubr.bf16.vlgmr.msra.gmra.mxu0 %v576_v61 }
 0x1e9   :  { %3882 = vmatpush3.bf16.msra.mxu0 %v4112_v3  ;;  %3897 = vmatprep.mubr.msk.bf16.mxu0 %vm4648_vm0, %v4647_v4 }
 0x1ea   :  { %3883 = vmatprep.subr.bf16.mxu0 %v4647_v4 }
 0x1ed   :  { %3884 = vmatpush3.bf16.msra.mxu0 %v4113_v5 }
 0x1ee   :  { %3885 = vmatprep.subr.bf16.mxu0 %v4647_v4 }
 0x1f1   :  { %3886 = vmatpush3.bf16.msra.mxu0 %v4114_v6 }
 0x1f2   :  { %3887 = vmatprep.subr.bf16.mxu0 %v4647_v4 }
 0x1f5   :  { %3888 = vmatpush3.bf16.msra.mxu0 %v4115_v7 }
 0x1f6   :  { %3889 = vmatprep.subr.bf16.mxu0 %v4647_v4 }
 0x1f9   :  { %3890 = vmatpush3.bf16.msra.mxu0 %v4116_v8 }
 0x1fa   :  { %3891 = vmatprep.subr.bf16.mxu0 %v4647_v4 }
 0x1fd   :  { %3892 = vmatpush3.bf16.msra.mxu0 %v4117_v24 }
 0x1fe   :  { %3893 = vmatprep.subr.bf16.mxu0 %v4647_v4 }
 0x201   :  { %3894 = vmatpush3.bf16.msra.mxu0 %v4118_v25 }
 0x202   :  { %3895 = vmatprep.subr.bf16.mxu0 %v4647_v4 }
 0x205   :  { %3896 = vmatpush3.bf16.msra.mxu0 %v4119_v26 }
 0x2a8   :  { %v783_v12 = vpop.f32.mrf.mxu0 }
 0x2a9   :  { %v784_v13 = vadd.f32 %v783_v12, %v582_v10 }
 0x2aa   :  { %v785_v14 = vpop.f32.mrf.mxu0 }
 0x2ab   :  { %v786_v15 = vadd.f32 %v785_v14, %v586_v11  ;;  %v790_v16 = vmax.f32 %v784_v13, 0.0 }
 0x2ac   :  { %v787_v17 = vpop.f32.mrf.mxu0 }
 0x2ad   :  { %v791_v19 = vmax.f32 %v786_v15, 0.0  ;;  %v826_v23 = vpack.c.bf16 %v790_v16, %v790_v16 }
 0x2ae   :  { %v788_v21 = vpop.f32.mrf.mxu0 }
 0x2af   :  { %v827_v22 = vpack.c.bf16 %v791_v19, %v791_v19 }
 0x2b1   :  { %962 = vmatprep.mubr.bf16.mxu1 %v827_v22 }
 0x2b2   :  { %963 = vmatmul.mubr.bf16.vlgmr.msra.gmra.mxu1 %v826_v23 }
 0x2b3   :  { %3917 = vmatprep.mubr.msk.bf16.mxu1 %vm4648_vm0, %v4647_v4  ;;  %3902 = vmatpush3.bf16.msra.mxu1 %v4120_v27 }
 0x2b4   :  { %3903 = vmatprep.subr.bf16.mxu1 %v4647_v4 }
 0x2b7   :  { %3904 = vmatpush3.bf16.msra.mxu1 %v4121_v28 }
 0x2b8   :  { %3905 = vmatprep.subr.bf16.mxu1 %v4647_v4 }
 0x2bb   :  { %3906 = vmatpush3.bf16.msra.mxu1 %v4122_v29 }
 0x2bc   :  { %3907 = vmatprep.subr.bf16.mxu1 %v4647_v4 }
 0x2bf   :  { %3908 = vmatpush3.bf16.msra.mxu1 %v4123_v30 }
 0x2c0   :  { %3909 = vmatprep.subr.bf16.mxu1 %v4647_v4 }
 0x2c3   :  { %3910 = vmatpush3.bf16.msra.mxu1 %v4124_v31 }
 0x2c4   :  { %3911 = vmatprep.subr.bf16.mxu1 %v4647_v4 }
 0x2c7   :  { %3912 = vmatpush3.bf16.msra.mxu1 %v4125_v32 }
 0x2c8   :  { %3913 = vmatprep.subr.bf16.mxu1 %v4647_v4 }
 0x2cb   :  { %3914 = vmatpush3.bf16.msra.mxu1 %v4126_v43 }
 0x2cc   :  { %3915 = vmatprep.subr.bf16.mxu1 %v4647_v4 }
 0x2cf   :  { %3916 = vmatpush3.bf16.msra.mxu1 %v4127_v44 }
 0x372   :  { %v3795_v34 = vpop.f32.mrf.mxu1 }
 0x374   :  { %v3796_v36 = vpop.f32.mrf.mxu1 }
 0x375   :  { %v3797_v37 = vadd.f32 %v3796_v36, %v3795_v34 }
 0x376   :  { %v3798_v38 = vpop.f32.mrf.mxu1 }
 0x377   :  { %v965_v39 = vadd.f32 %v3797_v37, %v832_v35 }
 0x378   :  { %v3799_v40 = vpop.f32.mrf.mxu1 }
 0x379   :  { %v970_v41 = vmax.f32 %v965_v39, 0.0 }
 0x37b   :  { %v989_v42 = vpack.c.bf16 %v970_v41, %v970_v41 }
 0x37d   :  { %3898 = vmatmul.mubr.bf16.vlgmr.msra.gmra.mxu0 %v989_v42 }
 0x43d   :  { %v1078_v47 = vpop.f32.mrf.mxu0 }
 0x43e   :  { %v1079_v48 = vadd.f32 %v1078_v47, %v994_v46 }
 0x43f   :  { %v3899_v49 = vpop.f32.mrf.mxu0 }
 0x440   :  { %v1084_v50 = vmax.f32 %v1079_v48, 0.0 }
 0x441   :  { %v1081_v51 = vpop.f32.mrf.mxu0 }
 0x442   :  { %v1104_v52 = vpack.c.bf16 %v1084_v50, %v1084_v50 }
 0x443   :  { %v3900_v53 = vpop.f32.mrf.mxu0 }
 0x444   :  { %3918 = vmatmul.mubr.bf16.vlgmr.msra.gmra.mxu1 %v1104_v52 }
 0x445   :  { %4563 = shalt.err (!%p4560_p10)  }
 0x446   :  { %101 = dma.hbm_to_vmem [thread:$0]  %s4910_s7, 2048, %s99_s4, [#allocation6] }
 0x447   :  { %s4572_s3 = scalar_lea.vmem %s111_s24, 4096  ;;  %p4577_p12 = scmp.lt.s32.totalorder %s111_s24, %s111_s24 }
 0x448   :  { %p4573_p11 = scmp.ne.s32.totalorder %s111_s24, %s4572_s3  ;;  %p4578_p13 = scmp.lt.s32.totalorder %s4572_s3, %s4572_s3 }
 0x44a   :  { %p4579_p0 = por %p4578_p13, %p4577_p12 }
 0x44c   :  { %p4580_p1 = pnand %p4579_p0, %p4573_p11 }
 0x44e   :  { %4583 = shalt.err (!%p4580_p1)  }
 0x44f   :  { %113 = dma.hbm_to_vmem [thread:$0]  %s4911_s8, 4096, %s111_s24, [#allocation6 + $0x1] }
 0x450   :  { %s4651_s5 = smov [#allocation4]   ;;  %s4652_s0 = smov [#allocation5]  }
 0x451   :  { %s122_s6 = sshll.u32 %s4651_s5, 4  ;;  %s134_s30 = sshll.u32 %s4652_s0, 4  ;;  %s123_s6 = int_to_ptr.vmem [resolvable:$true] %s122_s6  ;;  %s135_s30 = int_to_ptr.vmem [resolvable:$true] %s134_s30 }
 0x452   :  { %s4592_s14 = scalar_lea.vmem %s123_s6, 20480  ;;  %p4597_p3 = scmp.lt.s32.totalorder %s123_s6, %s123_s6 }
 0x453   :  { %p4593_p2 = scmp.ne.s32.totalorder %s123_s6, %s4592_s14  ;;  %p4598_p4 = scmp.lt.s32.totalorder %s4592_s14, %s4592_s14 }
 0x455   :  { %p4599_p5 = por %p4598_p4, %p4597_p3 }
 0x457   :  { %p4600_p6 = pnand %p4599_p5, %p4593_p2 }
 0x459   :  { %4603 = shalt.err (!%p4600_p6)  }
 0x45a   :  { %125 = dma.hbm_to_vmem [thread:$0]  %s4912_s9, 20480, %s123_s6, [#allocation6 + $0x2] }
 0x45b   :  { %s4612_s16 = scalar_lea.vmem %s135_s30, 4096  ;;  %p4617_p8 = scmp.lt.s32.totalorder %s135_s30, %s135_s30 }
 0x45c   :  { %p4613_p7 = scmp.ne.s32.totalorder %s135_s30, %s4612_s16  ;;  %p4618_p9 = scmp.lt.s32.totalorder %s4612_s16, %s4612_s16 }
 0x45e   :  { %p4619_p10 = por %p4618_p9, %p4617_p8 }
 0x460   :  { %p4620_p11 = pnand %p4619_p10, %p4613_p7 }
 0x462   :  { %4623 = shalt.err (!%p4620_p11)  }
 0x463   :  { %137 = dma.hbm_to_vmem [thread:$0]  %s4913_s10, 4096, %s135_s30, [#allocation6 + $0x3]  ;;  %v3515_v54 = vld [vmem:[%s4914_s11 + $0xa] sm:$0x3]  ;;  %v1199_v57 = vld [vmem:[%s4904_s1] sm:$0xff] }
 0x464   :  { %v1109_v55 = vrot.slane %v3515_v54, %v4739_v18 }
 0x504   :  { %v1193_v56 = vpop.f32.mrf.mxu1 }
 0x505   :  { %v4805_v58 = vadd.f32 %v1193_v56, %v1109_v55 }
 0x506   :  { %v3919_v59 = vpop.f32.mrf.mxu1 }
 0x507   :  { %v1200_v60 = vadd.f32 %v1199_v57, %v4805_v58 }
 0x508   :  { %v1196_v61 = vpop.f32.mrf.mxu1 }
 0x50a   :  { %v3920_v62 = vpop.f32.mrf.mxu1 }
 0x50b   :  { %4630 = dma.done.wait [#allocation6], 2048 }
 0x50c   :  { %4631 = vsyncadd [#allocation6], 4294965248  ;;  %3921 = vmatprep.subr.bf16.mxu0 %v4647_v4  ;;  %3937 = vmatprep.mubr.msk.bf16.mxu0 %vm4648_vm0, %v4647_v4  ;;  %v4128_v63 = vld [vmem:[#allocation2 + $0x38] sm:$0xff]   ;;  %v4129_v1 = vld [vmem:[#allocation2 + $0x30] sm:$0xff]   ;;  %v1224_v15 = vpack.c.bf16 %v1200_v60, %v1200_v60 }
 0x50d   :  { %3941 = vmatprep.subr.bf16.mxu1 %v4647_v4  ;;  %3957 = vmatprep.mubr.msk.bf16.mxu1 %vm4648_vm0, %v4647_v4  ;;  %v4130_v2 = vld [vmem:[#allocation2 + $0x28] sm:$0xff]   ;;  %v4136_v3 = vld [vmem:[#allocation2 + $0x78] sm:$0xff]   ;;  %v4131_v5 = vld [vmem:[#allocation2 + $0x20] sm:$0xff]  }
 0x50e   :  { %3922 = vmatpush3.bf16.msra.mxu0 %v4128_v63  ;;  %3942 = vmatpush3.bf16.msra.mxu1 %v4136_v3  ;;  %v4137_v6 = vld [vmem:[#allocation2 + $0x70] sm:$0xff]   ;;  %v4132_v7 = vld [vmem:[#allocation2 + $0x18] sm:$0xff]   ;;  %v4138_v8 = vld [vmem:[#allocation2 + $0x68] sm:$0xff]  }
 0x50f   :  { %3923 = vmatprep.subr.bf16.mxu0 %v4647_v4  ;;  %3943 = vmatprep.subr.bf16.mxu1 %v4647_v4  ;;  %v4133_v9 = vld [vmem:[#allocation2 + $0x10] sm:$0xff]   ;;  %v4139_v10 = vld [vmem:[#allocation2 + $0x60] sm:$0xff]   ;;  %v4134_v11 = vld [vmem:[#allocation2 + $0x8] sm:$0xff]  }
 0x510   :  { %v4140_v12 = vld [vmem:[#allocation2 + $0x58] sm:$0xff]   ;;  %v4135_v13 = vld [vmem:[#allocation2] sm:$0xff]   ;;  %v4141_v14 = vld [vmem:[#allocation2 + $0x50] sm:$0xff]  }
 0x511   :  { %v4142_v16 = vld [vmem:[#allocation2 + $0x48] sm:$0xff]   ;;  %v4143_v17 = vld [vmem:[#allocation2 + $0x40] sm:$0xff]  }
 0x512   :  { %3924 = vmatpush3.bf16.msra.mxu0 %v4129_v1  ;;  %3944 = vmatpush3.bf16.msra.mxu1 %v4137_v6  ;;  %v3524_v19 = vld [vmem:[%s4914_s11 + $0xc] sm:$0x3] }
 0x513   :  { %3925 = vmatprep.subr.bf16.mxu0 %v4647_v4  ;;  %3945 = vmatprep.subr.bf16.mxu1 %v4647_v4  ;;  %v1229_v21 = vrot.slane %v3524_v19, %v4739_v18 }
 0x516   :  { %3926 = vmatpush3.bf16.msra.mxu0 %v4130_v2  ;;  %3946 = vmatpush3.bf16.msra.mxu1 %v4138_v8 }
 0x517   :  { %3927 = vmatprep.subr.bf16.mxu0 %v4647_v4  ;;  %3947 = vmatprep.subr.bf16.mxu1 %v4647_v4 }
 0x51a   :  { %3928 = vmatpush3.bf16.msra.mxu0 %v4131_v5  ;;  %3948 = vmatpush3.bf16.msra.mxu1 %v4139_v10 }
 0x51b   :  { %3929 = vmatprep.subr.bf16.mxu0 %v4647_v4  ;;  %3949 = vmatprep.subr.bf16.mxu1 %v4647_v4 }
 0x51e   :  { %3930 = vmatpush3.bf16.msra.mxu0 %v4132_v7  ;;  %3950 = vmatpush3.bf16.msra.mxu1 %v4140_v12 }
 0x51f   :  { %3931 = vmatprep.subr.bf16.mxu0 %v4647_v4  ;;  %3951 = vmatprep.subr.bf16.mxu1 %v4647_v4 }
 0x522   :  { %3932 = vmatpush3.bf16.msra.mxu0 %v4133_v9  ;;  %3952 = vmatpush3.bf16.msra.mxu1 %v4141_v14 }
 0x523   :  { %3933 = vmatprep.subr.bf16.mxu0 %v4647_v4  ;;  %3953 = vmatprep.subr.bf16.mxu1 %v4647_v4 }
 0x526   :  { %3934 = vmatpush3.bf16.msra.mxu0 %v4134_v11  ;;  %3954 = vmatpush3.bf16.msra.mxu1 %v4142_v16 }
 0x527   :  { %3935 = vmatprep.subr.bf16.mxu0 %v4647_v4  ;;  %3955 = vmatprep.subr.bf16.mxu1 %v4647_v4  ;;  %v3533_v4 = vld [vmem:[%s4914_s11 + $0xe] sm:$0x3] }
 0x528   :  { %v1344_v29 = vrot.slane %v3533_v4, %v4739_v18 }
 0x52a   :  { %3936 = vmatpush3.bf16.msra.mxu0 %v4135_v13  ;;  %3956 = vmatpush3.bf16.msra.mxu1 %v4143_v17 }
 0x52d   :  { %3938 = vmatmul.mubr.bf16.vlgmr.msra.gmra.mxu0 %v1224_v15 }
 0x5ed   :  { %v1313_v22 = vpop.f32.mrf.mxu0 }
 0x5ee   :  { %v1314_v23 = vadd.f32 %v1313_v22, %v1229_v21 }
 0x5ef   :  { %v3939_v24 = vpop.f32.mrf.mxu0 }
 0x5f0   :  { %v1319_v25 = vmax.f32 %v1314_v23, 0.0 }
 0x5f1   :  { %v1316_v26 = vpop.f32.mrf.mxu0 }
 0x5f2   :  { %v1339_v27 = vpack.c.bf16 %v1319_v25, %v1319_v25 }
 0x5f3   :  { %v3940_v28 = vpop.f32.mrf.mxu0 }
 0x5f4   :  { %3958 = vmatmul.mubr.bf16.vlgmr.msra.gmra.mxu1 %v1339_v27 }
 0x6b4   :  { %v1428_v30 = vpop.f32.mrf.mxu1 }
 0x6b5   :  { %v1429_v31 = vadd.f32 %v1428_v30, %v1344_v29 }
 0x6b6   :  { %v3959_v32 = vpop.f32.mrf.mxu1 }
 0x6b7   :  { %v1434_v33 = vmax.f32 %v1429_v31, 0.0 }
 0x6b8   :  { %v1431_v34 = vpop.f32.mrf.mxu1 }
 0x6ba   :  { %v3960_v35 = vpop.f32.mrf.mxu1 }
 0x6bb   :  { %4632 = dma.done.wait [#allocation6 + $0x1], 4096 }
 0x6bc   :  { %4633 = vsyncadd [#allocation6 + $0x1], 4294963200  ;;  %1580 = vmatprep.mubr.bf16.mxu0 %v4646_v0  ;;  %v4144_v36 = vld [vmem:[#allocation3 + $0x74] ss:$8 sps:$4 sm:$0xff]   ;;  %v4146_v37 = vld [vmem:[#allocation3 + $0x70] ss:$8 sps:$4 sm:$0xff]   ;;  %v1456_v52 = vpack.c.bf16 %v1434_v33, %v1434_v33 }
 0x6bd   :  { %1548 = vmatprep.subr.bf16.mxu0 %v4144_v36  ;;  %v4147_v38 = vld [vmem:[#allocation3 + $0x64] ss:$8 sps:$4 sm:$0xff]   ;;  %v4149_v39 = vld [vmem:[#allocation3 + $0x60] ss:$8 sps:$4 sm:$0xff]   ;;  %v4150_v40 = vld [vmem:[#allocation3 + $0x54] ss:$8 sps:$4 sm:$0xff]  }
 0x6be   :  { %1549 = vmatpush1.bf16.msra.mxu0 %v4146_v37  ;;  %v4152_v41 = vld [vmem:[#allocation3 + $0x50] ss:$8 sps:$4 sm:$0xff]   ;;  %v4153_v42 = vld [vmem:[#allocation3 + $0x44] ss:$8 sps:$4 sm:$0xff]   ;;  %v4155_v43 = vld [vmem:[#allocation3 + $0x40] ss:$8 sps:$4 sm:$0xff]  }
 0x6bf   :  { %1550 = vmatprep.subr.bf16.mxu0 %v4147_v38  ;;  %v4156_v44 = vld [vmem:[#allocation3 + $0x34] ss:$8 sps:$4 sm:$0xff]   ;;  %v4158_v45 = vld [vmem:[#allocation3 + $0x30] ss:$8 sps:$4 sm:$0xff]   ;;  %v4159_v46 = vld [vmem:[#allocation3 + $0x24] ss:$8 sps:$4 sm:$0xff]  }
 0x6c0   :  { %v4161_v47 = vld [vmem:[#allocation3 + $0x20] ss:$8 sps:$4 sm:$0xff]   ;;  %v4162_v48 = vld [vmem:[#allocation3 + $0x14] ss:$8 sps:$4 sm:$0xff]   ;;  %v4164_v49 = vld [vmem:[#allocation3 + $0x10] ss:$8 sps:$4 sm:$0xff]  }
 0x6c1   :  { %v4165_v50 = vld [vmem:[#allocation3 + $0x4] ss:$8 sps:$4 sm:$0xff]   ;;  %v4167_v51 = vld [vmem:[#allocation3] ss:$8 sps:$4 sm:$0xff]   ;;  %v3542_v53 = vld [vmem:[%s4914_s11 + $0x10] sm:$0x3] }
 0x6c2   :  { %1551 = vmatpush1.bf16.msra.mxu0 %v4149_v39  ;;  %v1461_v54 = vrot.slane %v3542_v53, %v4739_v18  ;;  %v1465_v55 = vrot.slane %v3542_v53, %v4744_v20 }
 0x6c3   :  { %1552 = vmatprep.subr.bf16.mxu0 %v4150_v40 }
 0x6c6   :  { %1553 = vmatpush1.bf16.msra.mxu0 %v4152_v41 }
 0x6c7   :  { %1554 = vmatprep.subr.bf16.mxu0 %v4153_v42 }
 0x6ca   :  { %1555 = vmatpush1.bf16.msra.mxu0 %v4155_v43 }
 0x6cb   :  { %1556 = vmatprep.subr.bf16.mxu0 %v4156_v44 }
 0x6ce   :  { %1557 = vmatpush1.bf16.msra.mxu0 %v4158_v45 }
 0x6cf   :  { %1558 = vmatprep.subr.bf16.mxu0 %v4159_v46 }
 0x6d2   :  { %1559 = vmatpush1.bf16.msra.mxu0 %v4161_v47 }
 0x6d3   :  { %1560 = vmatprep.subr.bf16.mxu0 %v4162_v48 }
 0x6d6   :  { %1561 = vmatpush1.bf16.msra.mxu0 %v4164_v49 }
 0x6d7   :  { %1562 = vmatprep.subr.bf16.mxu0 %v4165_v50 }
 0x6da   :  { %1563 = vmatpush1.bf16.msra.mxu0 %v4167_v51 }
 0x6dd   :  { %1581 = vmatmul.mubr.bf16.vlgmr.msra.gmra.mxu0 %v1456_v52 }
 0x79d   :  { %v1582_v56 = vpop.f32.mrf.mxu0 }
 0x79e   :  { %v4842_v57 = vadd.f32 %v1582_v56, %v1461_v54 }
 0x79f   :  { %v1584_v59 = vpop.f32.mrf.mxu0 }
 0x7a0   :  { %v1589_v60 = vmax.f32 %v4842_v57, 0.0  ;;  %v1585_v61 = vadd.f32 %v1584_v59, %v1465_v55 }
 0x7a1   :  { %v1586_v62 = vpop.f32.mrf.mxu0 }
 0x7a2   :  { %v1590_v63 = vmax.f32 %v1585_v61, 0.0 }
 0x7a3   :  { %v1587_v1 = vpop.f32.mrf.mxu0 }
 0x7a4   :  { %4634 = dma.done.wait [#allocation6 + $0x2], 20480 }
 0x7a5   :  { %4635 = vsyncadd [#allocation6 + $0x2], 4294946816  ;;  %v1631_v2 = vpack.c.bf16 %v1590_v63, %v1590_v63  ;;  %v4168_v3 = vld [vmem:[#allocation4 + $0x74] ss:$8 sps:$4 sm:$0xff]   ;;  %v4170_v5 = vld [vmem:[#allocation4 + $0x70] ss:$8 sps:$4 sm:$0xff]   ;;  %v1630_v62 = vpack.c.bf16 %v1589_v60, %v1589_v60 }
 0x7a6   :  { %1803 = vmatprep.subr.bf16.mxu1 %v4168_v3  ;;  %v4171_v6 = vld [vmem:[#allocation4 + $0x64] ss:$8 sps:$4 sm:$0xff]   ;;  %v4173_v7 = vld [vmem:[#allocation4 + $0x60] ss:$8 sps:$4 sm:$0xff]   ;;  %v4174_v8 = vld [vmem:[#allocation4 + $0x54] ss:$8 sps:$4 sm:$0xff]  }
 0x7a7   :  { %1835 = vmatprep.mubr.bf16.mxu1 %v1631_v2  ;;  %1804 = vmatpush1.bf16.msra.mxu1 %v4170_v5  ;;  %v4176_v9 = vld [vmem:[#allocation4 + $0x50] ss:$8 sps:$4 sm:$0xff]   ;;  %v4177_v10 = vld [vmem:[#allocation4 + $0x44] ss:$8 sps:$4 sm:$0xff]   ;;  %v4179_v11 = vld [vmem:[#allocation4 + $0x40] ss:$8 sps:$4 sm:$0xff]  }
 0x7a8   :  { %1805 = vmatprep.subr.bf16.mxu1 %v4171_v6  ;;  %v4180_v12 = vld [vmem:[#allocation4 + $0x34] ss:$8 sps:$4 sm:$0xff]   ;;  %v4182_v13 = vld [vmem:[#allocation4 + $0x30] ss:$8 sps:$4 sm:$0xff]   ;;  %v4183_v14 = vld [vmem:[#allocation4 + $0x24] ss:$8 sps:$4 sm:$0xff]  }
 0x7a9   :  { %v4185_v15 = vld [vmem:[#allocation4 + $0x20] ss:$8 sps:$4 sm:$0xff]   ;;  %v4186_v16 = vld [vmem:[#allocation4 + $0x14] ss:$8 sps:$4 sm:$0xff]   ;;  %v4218_v19 = vld [vmem:[#allocation4 + $0x170] ss:$8 sps:$4 sm:$0xff]  }
 0x7aa   :  { %v4216_v17 = vld [vmem:[#allocation4 + $0x174] ss:$8 sps:$4 sm:$0xff]   ;;  %v4188_v21 = vld [vmem:[#allocation4 + $0x10] ss:$8 sps:$4 sm:$0xff]   ;;  %v4219_v22 = vld [vmem:[#allocation4 + $0x164] ss:$8 sps:$4 sm:$0xff]  }
 0x7ab   :  { %1806 = vmatpush1.bf16.msra.mxu1 %v4173_v7  ;;  %v4189_v23 = vld [vmem:[#allocation4 + $0x4] ss:$8 sps:$4 sm:$0xff]   ;;  %2054 = vmatprep.subr.bf16.mxu0 %v4216_v17  ;;  %v4221_v24 = vld [vmem:[#allocation4 + $0x160] ss:$8 sps:$4 sm:$0xff]   ;;  %v4222_v25 = vld [vmem:[#allocation4 + $0x154] ss:$8 sps:$4 sm:$0xff]  }
 0x7ac   :  { %1807 = vmatprep.subr.bf16.mxu1 %v4174_v8  ;;  %2055 = vmatpush1.bf16.msra.mxu0 %v4218_v19  ;;  %v4191_v26 = vld [vmem:[#allocation4] ss:$8 sps:$4 sm:$0xff]   ;;  %v4192_v27 = vld [vmem:[#allocation4 + $0xf4] ss:$8 sps:$4 sm:$0xff]   ;;  %v4224_v28 = vld [vmem:[#allocation4 + $0x150] ss:$8 sps:$4 sm:$0xff]  }
 0x7ad   :  { %2056 = vmatprep.subr.bf16.mxu0 %v4219_v22  ;;  %v4225_v4 = vld [vmem:[#allocation4 + $0x144] ss:$8 sps:$4 sm:$0xff]   ;;  %v4194_v29 = vld [vmem:[#allocation4 + $0xf0] ss:$8 sps:$4 sm:$0xff]   ;;  %v4227_v31 = vld [vmem:[#allocation4 + $0x140] ss:$8 sps:$4 sm:$0xff]  }
 0x7ae   :  { %v4195_v30 = vld [vmem:[#allocation4 + $0xe4] ss:$8 sps:$4 sm:$0xff]   ;;  %v4228_v32 = vld [vmem:[#allocation4 + $0x134] ss:$8 sps:$4 sm:$0xff]   ;;  %v4197_v33 = vld [vmem:[#allocation4 + $0xe0] ss:$8 sps:$4 sm:$0xff]  }
 0x7af   :  { %1808 = vmatpush1.bf16.msra.mxu1 %v4176_v9  ;;  %v4198_v34 = vld [vmem:[#allocation4 + $0xd4] ss:$8 sps:$4 sm:$0xff]   ;;  %v4230_v35 = vld [vmem:[#allocation4 + $0x130] ss:$8 sps:$4 sm:$0xff]   ;;  %v4231_v36 = vld [vmem:[#allocation4 + $0x124] ss:$8 sps:$4 sm:$0xff]  }
 0x7b0   :  { %1809 = vmatprep.subr.bf16.mxu1 %v4177_v10  ;;  %2057 = vmatpush1.bf16.msra.mxu0 %v4221_v24  ;;  %v4200_v37 = vld [vmem:[#allocation4 + $0xd0] ss:$8 sps:$4 sm:$0xff]   ;;  %v4201_v38 = vld [vmem:[#allocation4 + $0xc4] ss:$8 sps:$4 sm:$0xff]   ;;  %v4233_v39 = vld [vmem:[#allocation4 + $0x120] ss:$8 sps:$4 sm:$0xff]  }
 0x7b1   :  { %2058 = vmatprep.subr.bf16.mxu0 %v4222_v25  ;;  %v4234_v40 = vld [vmem:[#allocation4 + $0x114] ss:$8 sps:$4 sm:$0xff]   ;;  %v4203_v41 = vld [vmem:[#allocation4 + $0xc0] ss:$8 sps:$4 sm:$0xff]   ;;  %v4236_v43 = vld [vmem:[#allocation4 + $0x110] ss:$8 sps:$4 sm:$0xff]  }
 0x7b2   :  { %v4204_v42 = vld [vmem:[#allocation4 + $0xb4] ss:$8 sps:$4 sm:$0xff]   ;;  %v4237_v44 = vld [vmem:[#allocation4 + $0x104] ss:$8 sps:$4 sm:$0xff]   ;;  %v4206_v45 = vld [vmem:[#allocation4 + $0xb0] ss:$8 sps:$4 sm:$0xff]  }
 0x7b3   :  { %1810 = vmatpush1.bf16.msra.mxu1 %v4179_v11  ;;  %v4207_v46 = vld [vmem:[#allocation4 + $0xa4] ss:$8 sps:$4 sm:$0xff]   ;;  %v4239_v47 = vld [vmem:[#allocation4 + $0x100] ss:$8 sps:$4 sm:$0xff]   ;;  %v4240_v48 = vld [vmem:[#allocation4 + $0x1f4] ss:$8 sps:$4 sm:$0xff]  }
 0x7b4   :  { %1811 = vmatprep.subr.bf16.mxu1 %v4180_v12  ;;  %2059 = vmatpush1.bf16.msra.mxu0 %v4224_v28  ;;  %v4209_v49 = vld [vmem:[#allocation4 + $0xa0] ss:$8 sps:$4 sm:$0xff]   ;;  %v4210_v50 = vld [vmem:[#allocation4 + $0x94] ss:$8 sps:$4 sm:$0xff]   ;;  %v4242_v51 = vld [vmem:[#allocation4 + $0x1f0] ss:$8 sps:$4 sm:$0xff]  }
 0x7b5   :  { %2060 = vmatprep.subr.bf16.mxu0 %v4225_v4  ;;  %v4243_v52 = vld [vmem:[#allocation4 + $0x1e4] ss:$8 sps:$4 sm:$0xff]   ;;  %v4212_v53 = vld [vmem:[#allocation4 + $0x90] ss:$8 sps:$4 sm:$0xff]   ;;  %v4245_v55 = vld [vmem:[#allocation4 + $0x1e0] ss:$8 sps:$4 sm:$0xff]  }
 0x7b6   :  { %v4213_v54 = vld [vmem:[#allocation4 + $0x84] ss:$8 sps:$4 sm:$0xff]   ;;  %v4246_v56 = vld [vmem:[#allocation4 + $0x1d4] ss:$8 sps:$4 sm:$0xff]   ;;  %v4215_v59 = vld [vmem:[#allocation4 + $0x80] ss:$8 sps:$4 sm:$0xff]  }
 0x7b7   :  { %1812 = vmatpush1.bf16.msra.mxu1 %v4182_v13  ;;  %v4248_v61 = vld [vmem:[#allocation4 + $0x1d0] ss:$8 sps:$4 sm:$0xff]   ;;  %v4249_v63 = vld [vmem:[#allocation4 + $0x1c4] ss:$8 sps:$4 sm:$0xff]   ;;  %v4251_v1 = vld [vmem:[#allocation4 + $0x1c0] ss:$8 sps:$4 sm:$0xff]  }
 0x7b8   :  { %1813 = vmatprep.subr.bf16.mxu1 %v4183_v14  ;;  %2061 = vmatpush1.bf16.msra.mxu0 %v4227_v31  ;;  %v4252_v2 = vld [vmem:[#allocation4 + $0x1b4] ss:$8 sps:$4 sm:$0xff]   ;;  %v4254_v3 = vld [vmem:[#allocation4 + $0x1b0] ss:$8 sps:$4 sm:$0xff]   ;;  %v4255_v5 = vld [vmem:[#allocation4 + $0x1a4] ss:$8 sps:$4 sm:$0xff]  }
 0x7b9   :  { %2062 = vmatprep.subr.bf16.mxu0 %v4228_v32  ;;  %v4257_v6 = vld [vmem:[#allocation4 + $0x1a0] ss:$8 sps:$4 sm:$0xff]   ;;  %v4258_v7 = vld [vmem:[#allocation4 + $0x194] ss:$8 sps:$4 sm:$0xff]   ;;  %v4260_v57 = vld [vmem:[#allocation4 + $0x190] ss:$8 sps:$4 sm:$0xff]  }
 0x7ba   :  { %v4261_v60 = vld [vmem:[#allocation4 + $0x184] ss:$8 sps:$4 sm:$0xff]   ;;  %v4263_v8 = vld [vmem:[#allocation4 + $0x180] ss:$8 sps:$4 sm:$0xff]   ;;  %v3559_v9 = vld [vmem:[%s4914_s11 + $0x12] sm:$0x3] }
 0x7bb   :  { %1814 = vmatpush1.bf16.msra.mxu1 %v4185_v15  ;;  %v1636_v10 = vrot.slane %v3559_v9, %v4739_v18  ;;  %v1640_v11 = vrot.slane %v3559_v9, %v4744_v20  ;;  %v3592_v24 = vld [vmem:[%s4914_s11 + $0x14] sm:$0x3] }
 0x7bc   :  { %1815 = vmatprep.subr.bf16.mxu1 %v4186_v16  ;;  %2063 = vmatpush1.bf16.msra.mxu0 %v4230_v35  ;;  %v1887_v25 = vrot.slane %v3592_v24, %v4739_v18 }
 0x7bd   :  { %2064 = vmatprep.subr.bf16.mxu0 %v4231_v36 }
 0x7bf   :  { %1816 = vmatpush1.bf16.msra.mxu1 %v4188_v21 }
 0x7c0   :  { %1817 = vmatprep.subr.bf16.mxu1 %v4189_v23  ;;  %2065 = vmatpush1.bf16.msra.mxu0 %v4233_v39 }
 0x7c1   :  { %2066 = vmatprep.subr.bf16.mxu0 %v4234_v40 }
 0x7c3   :  { %1818 = vmatpush1.bf16.msra.mxu1 %v4191_v26  ;;  %v1891_v26 = vrot.slane %v3592_v24, %v4744_v20 }
 0x7c4   :  { %1819 = vmatprep.subr.bf16.mxu1 %v4192_v27  ;;  %2067 = vmatpush1.bf16.msra.mxu0 %v4236_v43 }
 0x7c5   :  { %2068 = vmatprep.subr.bf16.mxu0 %v4237_v44 }
 0x7c7   :  { %1820 = vmatpush2.bf16.msra.mxu1 %v4194_v29 }
 0x7c8   :  { %1821 = vmatprep.subr.bf16.mxu1 %v4195_v30  ;;  %2069 = vmatpush1.bf16.msra.mxu0 %v4239_v47 }
 0x7c9   :  { %2070 = vmatprep.subr.bf16.mxu0 %v4240_v48 }
 0x7cb   :  { %1822 = vmatpush2.bf16.msra.mxu1 %v4197_v33 }
 0x7cc   :  { %1823 = vmatprep.subr.bf16.mxu1 %v4198_v34  ;;  %2071 = vmatpush2.bf16.msra.mxu0 %v4242_v51 }
 0x7cd   :  { %2072 = vmatprep.subr.bf16.mxu0 %v4243_v52 }
 0x7cf   :  { %1824 = vmatpush2.bf16.msra.mxu1 %v4200_v37 }
 0x7d0   :  { %1825 = vmatprep.subr.bf16.mxu1 %v4201_v38  ;;  %2073 = vmatpush2.bf16.msra.mxu0 %v4245_v55 }
 0x7d1   :  { %2074 = vmatprep.subr.bf16.mxu0 %v4246_v56 }
 0x7d3   :  { %1826 = vmatpush2.bf16.msra.mxu1 %v4203_v41 }
 0x7d4   :  { %1827 = vmatprep.subr.bf16.mxu1 %v4204_v42  ;;  %2075 = vmatpush2.bf16.msra.mxu0 %v4248_v61 }
 0x7d5   :  { %2076 = vmatprep.subr.bf16.mxu0 %v4249_v63 }
 0x7d7   :  { %1828 = vmatpush2.bf16.msra.mxu1 %v4206_v45 }
 0x7d8   :  { %1829 = vmatprep.subr.bf16.mxu1 %v4207_v46  ;;  %2077 = vmatpush2.bf16.msra.mxu0 %v4251_v1 }
 0x7d9   :  { %2078 = vmatprep.subr.bf16.mxu0 %v4252_v2 }
 0x7db   :  { %1830 = vmatpush2.bf16.msra.mxu1 %v4209_v49 }
 0x7dc   :  { %1831 = vmatprep.subr.bf16.mxu1 %v4210_v50  ;;  %2079 = vmatpush2.bf16.msra.mxu0 %v4254_v3 }
 0x7dd   :  { %2080 = vmatprep.subr.bf16.mxu0 %v4255_v5 }
 0x7df   :  { %1832 = vmatpush2.bf16.msra.mxu1 %v4212_v53 }
 0x7e0   :  { %1833 = vmatprep.subr.bf16.mxu1 %v4213_v54  ;;  %2081 = vmatpush2.bf16.msra.mxu0 %v4257_v6 }
 0x7e1   :  { %2082 = vmatprep.subr.bf16.mxu0 %v4258_v7 }
 0x7e3   :  { %1834 = vmatpush2.bf16.msra.mxu1 %v4215_v59 }
 0x7e4   :  { %2083 = vmatpush2.bf16.msra.mxu0 %v4260_v57 }
 0x7e5   :  { %2084 = vmatprep.subr.bf16.mxu0 %v4261_v60 }
 0x7e6   :  { %1836 = vmatmul.mubr.bf16.vlgmr.msra.gmra.mxu1 %v1630_v62 }
 0x7e8   :  { %2085 = vmatpush2.bf16.msra.mxu0 %v4263_v8 }
 0x8a6   :  { %v1837_v12 = vpop.f32.mrf.mxu1 }
 0x8a7   :  { %v1838_v13 = vadd.f32 %v1837_v12, %v1636_v10 }
 0x8a8   :  { %v1839_v14 = vpop.f32.mrf.mxu1 }
 0x8a9   :  { %v1840_v15 = vadd.f32 %v1839_v14, %v1640_v11  ;;  %v1844_v16 = vmax.f32 %v1838_v13, 0.0 }
 0x8aa   :  { %v1841_v17 = vpop.f32.mrf.mxu1 }
 0x8ab   :  { %v1845_v19 = vmax.f32 %v1840_v15, 0.0  ;;  %v1881_v23 = vpack.c.bf16 %v1844_v16, %v1844_v16 }
 0x8ac   :  { %v1842_v21 = vpop.f32.mrf.mxu1 }
 0x8ad   :  { %v1882_v22 = vpack.c.bf16 %v1845_v19, %v1845_v19 }
 0x8af   :  { %2086 = vmatprep.mubr.bf16.mxu0 %v1882_v22 }
 0x8b0   :  { %2087 = vmatmul.mubr.bf16.vlgmr.msra.gmra.mxu0 %v1881_v23 }
 0x970   :  { %v2088_v27 = vpop.f32.mrf.mxu0 }
 0x971   :  { %v4858_v28 = vadd.f32 %v2088_v27, %v1887_v25 }
 0x972   :  { %v2090_v4 = vpop.f32.mrf.mxu0 }
 0x973   :  { %v2095_v29 = vmax.f32 %v4858_v28, 0.0  ;;  %v2091_v30 = vadd.f32 %v2090_v4, %v1891_v26 }
 0x974   :  { %v2092_v31 = vpop.f32.mrf.mxu0 }
 0x975   :  { %v2096_v32 = vmax.f32 %v2091_v30, 0.0 }
 0x976   :  { %v2093_v33 = vpop.f32.mrf.mxu0 }
 0x977   :  { %4636 = dma.done.wait [#allocation6 + $0x3], 4096 }
 0x978   :  { %4637 = vsyncadd [#allocation6 + $0x3], 4294963200  ;;  %2424 = vmatprep.mubr.bf16.mxu0 %v4646_v0  ;;  %v2136_v34 = vpack.c.bf16 %v2096_v32, %v2096_v32  ;;  %v4264_v35 = vld [vmem:[#allocation3 + $0xf4] ss:$8 sps:$4 sm:$0xff]   ;;  %v4266_v36 = vld [vmem:[#allocation3 + $0xf0] ss:$8 sps:$4 sm:$0xff]   ;;  %v2135_v8 = vpack.c.bf16 %v2095_v29, %v2095_v29 }
 0x979   :  { %2392 = vmatprep.subr.bf16.mxu0 %v4264_v35  ;;  %v4267_v37 = vld [vmem:[#allocation3 + $0xe4] ss:$8 sps:$4 sm:$0xff]   ;;  %v4269_v38 = vld [vmem:[#allocation3 + $0xe0] ss:$8 sps:$4 sm:$0xff]   ;;  %v4270_v39 = vld [vmem:[#allocation3 + $0xd4] ss:$8 sps:$4 sm:$0xff]  }
 0x97a   :  { %2271 = vmatprep.mubr.bf16.mxu1 %v2136_v34  ;;  %2393 = vmatpush1.bf16.msra.mxu0 %v4266_v36  ;;  %v4272_v40 = vld [vmem:[#allocation3 + $0xd0] ss:$8 sps:$4 sm:$0xff]   ;;  %v4273_v41 = vld [vmem:[#allocation3 + $0xc4] ss:$8 sps:$4 sm:$0xff]   ;;  %v4275_v42 = vld [vmem:[#allocation3 + $0xc0] ss:$8 sps:$4 sm:$0xff]  }
 0x97b   :  { %2394 = vmatprep.subr.bf16.mxu0 %v4267_v37  ;;  %v4276_v43 = vld [vmem:[#allocation3 + $0xb4] ss:$8 sps:$4 sm:$0xff]   ;;  %v4278_v45 = vld [vmem:[#allocation3 + $0xb0] ss:$8 sps:$4 sm:$0xff]   ;;  %v4292_v48 = vld [vmem:[#allocation5 + $0x68] sm:$0xff]  }
 0x97c   :  { %v4288_v44 = vld [vmem:[#allocation5 + $0x78] sm:$0xff]   ;;  %v4290_v46 = vld [vmem:[#allocation5 + $0x70] sm:$0xff]   ;;  %v4279_v49 = vld [vmem:[#allocation3 + $0xa4] ss:$8 sps:$4 sm:$0xff]  }
 0x97d   :  { %v4289_v0 = vld [vmem:[#allocation5 + $0x38] sm:$0xff]   ;;  %3837 = vmatprep.subr.bf16.mxu1 %v4288_v44  ;;  %v4291_v47 = vld [vmem:[#allocation5 + $0x30] sm:$0xff]   ;;  %v4281_v50 = vld [vmem:[#allocation3 + $0xa0] ss:$8 sps:$4 sm:$0xff]  }
 0x97e   :  { %2395 = vmatpush1.bf16.msra.mxu0 %v4269_v38  ;;  %3838 = vmatpush3.bf16.msra.mxu1 %v4289_v0  ;;  %v4293_v51 = vld [vmem:[#allocation5 + $0x28] sm:$0xff]   ;;  %v4294_v52 = vld [vmem:[#allocation5 + $0x60] sm:$0xff]   ;;  %v4282_v53 = vld [vmem:[#allocation3 + $0x94] ss:$8 sps:$4 sm:$0xff]  }
 0x97f   :  { %2396 = vmatprep.subr.bf16.mxu0 %v4270_v39  ;;  %3839 = vmatprep.subr.bf16.mxu1 %v4290_v46  ;;  %v4284_v54 = vld [vmem:[#allocation3 + $0x90] ss:$8 sps:$4 sm:$0xff]   ;;  %v2279_v55 = vld [vmem:[%s4905_s2] sm:$0xff]  ;;  %v4300_v6 = vld [vmem:[#allocation5 + $0x48] sm:$0xff]  }
 0x980   :  { %v4295_v56 = vld [vmem:[#allocation5 + $0x20] sm:$0xff]   ;;  %v4296_v59 = vld [vmem:[#allocation5 + $0x58] sm:$0xff]   ;;  %v2280_v63 = vadd.f32 %v2279_v55, %v4805_v58  ;;  %v4298_v2 = vld [vmem:[#allocation5 + $0x50] sm:$0xff]  }
 0x981   :  { %v4285_v61 = vld [vmem:[#allocation3 + $0x84] ss:$8 sps:$4 sm:$0xff]   ;;  %v4287_v62 = vld [vmem:[#allocation3 + $0x80] ss:$8 sps:$4 sm:$0xff]   ;;  %v4297_v1 = vld [vmem:[#allocation5 + $0x18] sm:$0xff]  }
 0x982   :  { %2397 = vmatpush1.bf16.msra.mxu0 %v4272_v40  ;;  %3840 = vmatpush3.bf16.msra.mxu1 %v4291_v47  ;;  %v2300_v3 = vpack.c.bf16 %v2280_v63, %v2280_v63  ;;  %v4299_v5 = vld [vmem:[#allocation5 + $0x10] sm:$0xff]   ;;  %v4301_v7 = vld [vmem:[#allocation5 + $0x8] sm:$0xff]   ;;  %v4302_v57 = vld [vmem:[#allocation5 + $0x40] sm:$0xff]  }
 0x983   :  { %2398 = vmatprep.subr.bf16.mxu0 %v4273_v41  ;;  %3841 = vmatprep.subr.bf16.mxu1 %v4292_v48  ;;  %v4303_v60 = vld [vmem:[#allocation5] sm:$0xff]   ;;  %v4306_v58 = vld [vmem:[#allocation4 + $0x274] ss:$8 sps:$4 sm:$0xff]   ;;  %v4304_v9 = vld [vmem:[#allocation4 + $0x270] ss:$8 sps:$4 sm:$0xff]  }
 0x984   :  { %v4309_v10 = vld [vmem:[#allocation4 + $0x264] ss:$8 sps:$4 sm:$0xff]   ;;  %v4307_v11 = vld [vmem:[#allocation4 + $0x260] ss:$8 sps:$4 sm:$0xff]   ;;  %v4312_v12 = vld [vmem:[#allocation4 + $0x254] ss:$8 sps:$4 sm:$0xff]  }
 0x985   :  { %v4310_v13 = vld [vmem:[#allocation4 + $0x250] ss:$8 sps:$4 sm:$0xff]   ;;  %v4315_v14 = vld [vmem:[#allocation4 + $0x244] ss:$8 sps:$4 sm:$0xff]   ;;  %v4313_v15 = vld [vmem:[#allocation4 + $0x240] ss:$8 sps:$4 sm:$0xff]  }
 0x986   :  { %2399 = vmatpush1.bf16.msra.mxu0 %v4275_v42  ;;  %3842 = vmatpush3.bf16.msra.mxu1 %v4293_v51  ;;  %v4318_v16 = vld [vmem:[#allocation4 + $0x234] ss:$8 sps:$4 sm:$0xff]   ;;  %v4316_v17 = vld [vmem:[#allocation4 + $0x230] ss:$8 sps:$4 sm:$0xff]   ;;  %v4321_v19 = vld [vmem:[#allocation4 + $0x224] ss:$8 sps:$4 sm:$0xff]  }
 0x987   :  { %2400 = vmatprep.subr.bf16.mxu0 %v4276_v43  ;;  %3843 = vmatprep.subr.bf16.mxu1 %v4294_v52  ;;  %v4319_v21 = vld [vmem:[#allocation4 + $0x220] ss:$8 sps:$4 sm:$0xff]   ;;  %v4324_v22 = vld [vmem:[#allocation4 + $0x214] ss:$8 sps:$4 sm:$0xff]   ;;  %v4322_v23 = vld [vmem:[#allocation4 + $0x210] ss:$8 sps:$4 sm:$0xff]  }
 0x988   :  { %v4327_v24 = vld [vmem:[#allocation4 + $0x204] ss:$8 sps:$4 sm:$0xff]   ;;  %v4325_v25 = vld [vmem:[#allocation4 + $0x200] ss:$8 sps:$4 sm:$0xff]   ;;  %v4330_v26 = vld [vmem:[#allocation4 + $0x2f4] ss:$8 sps:$4 sm:$0xff]  }
 0x989   :  { %v4328_v27 = vld [vmem:[#allocation4 + $0x2f0] ss:$8 sps:$4 sm:$0xff]   ;;  %v4333_v28 = vld [vmem:[#allocation4 + $0x2e4] ss:$8 sps:$4 sm:$0xff]   ;;  %v4331_v4 = vld [vmem:[#allocation4 + $0x2e0] ss:$8 sps:$4 sm:$0xff]  }
 0x98a   :  { %2401 = vmatpush1.bf16.msra.mxu0 %v4278_v45  ;;  %3844 = vmatpush3.bf16.msra.mxu1 %v4295_v56  ;;  %v4336_v29 = vld [vmem:[#allocation4 + $0x2d4] ss:$8 sps:$4 sm:$0xff]   ;;  %v4334_v30 = vld [vmem:[#allocation4 + $0x2d0] ss:$8 sps:$4 sm:$0xff]   ;;  %v4339_v31 = vld [vmem:[#allocation4 + $0x2c4] ss:$8 sps:$4 sm:$0xff]  }
 0x98b   :  { %2402 = vmatprep.subr.bf16.mxu0 %v4279_v49  ;;  %3845 = vmatprep.subr.bf16.mxu1 %v4296_v59  ;;  %v4337_v32 = vld [vmem:[#allocation4 + $0x2c0] ss:$8 sps:$4 sm:$0xff]   ;;  %v4342_v33 = vld [vmem:[#allocation4 + $0x2b4] ss:$8 sps:$4 sm:$0xff]   ;;  %v4340_v34 = vld [vmem:[#allocation4 + $0x2b0] ss:$8 sps:$4 sm:$0xff]  }
 0x98c   :  { %v4345_v35 = vld [vmem:[#allocation4 + $0x2a4] ss:$8 sps:$4 sm:$0xff]   ;;  %v4343_v36 = vld [vmem:[#allocation4 + $0x2a0] ss:$8 sps:$4 sm:$0xff]   ;;  %v4348_v37 = vld [vmem:[#allocation4 + $0x294] ss:$8 sps:$4 sm:$0xff]  }
 0x98d   :  { %v4346_v38 = vld [vmem:[#allocation4 + $0x290] ss:$8 sps:$4 sm:$0xff]   ;;  %v4351_v39 = vld [vmem:[#allocation4 + $0x284] ss:$8 sps:$4 sm:$0xff]   ;;  %v4349_v40 = vld [vmem:[#allocation4 + $0x280] ss:$8 sps:$4 sm:$0xff]  }
 0x98e   :  { %2403 = vmatpush1.bf16.msra.mxu0 %v4281_v50  ;;  %3846 = vmatpush3.bf16.msra.mxu1 %v4297_v1  ;;  %v4352_v41 = vld [vmem:[#allocation4 + $0x370] ss:$8 sps:$4 sm:$0xff]   ;;  %v4354_v42 = vld [vmem:[#allocation4 + $0x374] ss:$8 sps:$4 sm:$0xff]   ;;  %v4357_v43 = vld [vmem:[#allocation4 + $0x364] ss:$8 sps:$4 sm:$0xff]  }
 0x98f   :  { %2404 = vmatprep.subr.bf16.mxu0 %v4282_v53  ;;  %3847 = vmatprep.subr.bf16.mxu1 %v4298_v2  ;;  %v4355_v44 = vld [vmem:[#allocation4 + $0x360] ss:$8 sps:$4 sm:$0xff]   ;;  %v4360_v0 = vld [vmem:[#allocation4 + $0x354] ss:$8 sps:$4 sm:$0xff]   ;;  %v4358_v45 = vld [vmem:[#allocation4 + $0x350] ss:$8 sps:$4 sm:$0xff]  }
 0x990   :  { %v4363_v46 = vld [vmem:[#allocation4 + $0x344] ss:$8 sps:$4 sm:$0xff]   ;;  %v4361_v47 = vld [vmem:[#allocation4 + $0x340] ss:$8 sps:$4 sm:$0xff]   ;;  %v4366_v48 = vld [vmem:[#allocation4 + $0x334] ss:$8 sps:$4 sm:$0xff]  }
 0x991   :  { %v4364_v49 = vld [vmem:[#allocation4 + $0x330] ss:$8 sps:$4 sm:$0xff]   ;;  %v4369_v50 = vld [vmem:[#allocation4 + $0x324] ss:$8 sps:$4 sm:$0xff]   ;;  %v4367_v51 = vld [vmem:[#allocation4 + $0x320] ss:$8 sps:$4 sm:$0xff]  }
 0x992   :  { %2405 = vmatpush1.bf16.msra.mxu0 %v4284_v54  ;;  %3848 = vmatpush3.bf16.msra.mxu1 %v4299_v5  ;;  %v4372_v52 = vld [vmem:[#allocation4 + $0x314] ss:$8 sps:$4 sm:$0xff]   ;;  %v4370_v53 = vld [vmem:[#allocation4 + $0x310] ss:$8 sps:$4 sm:$0xff]   ;;  %v4375_v54 = vld [vmem:[#allocation4 + $0x304] ss:$8 sps:$4 sm:$0xff]  }
 0x993   :  { %2406 = vmatprep.subr.bf16.mxu0 %v4285_v61  ;;  %3849 = vmatprep.subr.bf16.mxu1 %v4300_v6  ;;  %v4373_v55 = vld [vmem:[#allocation4 + $0x300] ss:$8 sps:$4 sm:$0xff]   ;;  %v4378_v56 = vld [vmem:[#allocation4 + $0x3f4] ss:$8 sps:$4 sm:$0xff]   ;;  %v4376_v59 = vld [vmem:[#allocation4 + $0x3f0] ss:$8 sps:$4 sm:$0xff]  }
 0x994   :  { %v4381_v61 = vld [vmem:[#allocation4 + $0x3e4] ss:$8 sps:$4 sm:$0xff]   ;;  %v4384_v63 = vld [vmem:[#allocation4 + $0x3d4] ss:$8 sps:$4 sm:$0xff]   ;;  %v4382_v1 = vld [vmem:[#allocation4 + $0x3d0] ss:$8 sps:$4 sm:$0xff]  }
 0x995   :  { %v4387_v2 = vld [vmem:[#allocation4 + $0x3c4] ss:$8 sps:$4 sm:$0xff]   ;;  %v4390_v5 = vld [vmem:[#allocation4 + $0x3b4] ss:$8 sps:$4 sm:$0xff]   ;;  %v4388_v6 = vld [vmem:[#allocation4 + $0x3b0] ss:$8 sps:$4 sm:$0xff]  }
 0x996   :  { %2407 = vmatpush1.bf16.msra.mxu0 %v4287_v62  ;;  %3850 = vmatpush3.bf16.msra.mxu1 %v4301_v7  ;;  %v4379_v62 = vld [vmem:[#allocation4 + $0x3e0] ss:$8 sps:$4 sm:$0xff]   ;;  %v4393_v7 = vld [vmem:[#allocation4 + $0x3a4] ss:$8 sps:$4 sm:$0xff]  }
 0x997   :  { %3851 = vmatprep.subr.bf16.mxu1 %v4302_v57  ;;  %2894 = vmatprep.subr.bf16.mxu0 %v4354_v42  ;;  %v4391_v57 = vld [vmem:[#allocation4 + $0x3a0] ss:$8 sps:$4 sm:$0xff]   ;;  %v4417_v42 = vld [vmem:[#allocation4 + $0x424] ss:$8 sps:$4 sm:$0xff]  }
 0x999   :  { %2425 = vmatmul.mubr.bf16.vlgmr.msra.gmra.mxu0 %v2300_v3  ;;  %v4385_v3 = vld [vmem:[#allocation4 + $0x3c0] ss:$8 sps:$4 sm:$0xff]  }
 0x99a   :  { %3852 = vmatpush3.bf16.msra.mxu1 %v4303_v60  ;;  %2895 = vmatpush1.bf16.msra.mxu0 %v4352_v41  ;;  %v3642_v60 = vld [vmem:[%s4914_s11 + $0x18] sm:$0x3] }
 0x99b   :  { %2643 = vmatprep.subr.bf16.mxu1 %v4306_v58  ;;  %2896 = vmatprep.subr.bf16.mxu0 %v4357_v43  ;;  %v2305_v58 = vrot.slane %v3642_v60, %v4739_v18  ;;  %v4412_v41 = vld [vmem:[#allocation4 + $0x430] ss:$8 sps:$4 sm:$0xff]   ;;  %v4415_v43 = vld [vmem:[#allocation4 + $0x420] ss:$8 sps:$4 sm:$0xff]  }
 0x99d   :  { %2272 = vmatmul.mubr.bf16.vlgmr.msra.gmra.mxu1 %v2135_v8  ;;  %v2309_v8 = vrot.slane %v3642_v60, %v4744_v20 }
 0x99e   :  { %2644 = vmatpush1.bf16.msra.mxu1 %v4304_v9  ;;  %2897 = vmatpush1.bf16.msra.mxu0 %v4355_v44  ;;  %v4420_v44 = vld [vmem:[#allocation4 + $0x414] ss:$8 sps:$4 sm:$0xff]  }
 0x99f   :  { %2645 = vmatprep.subr.bf16.mxu1 %v4309_v10  ;;  %2898 = vmatprep.subr.bf16.mxu0 %v4360_v0  ;;  %v4418_v0 = vld [vmem:[#allocation4 + $0x410] ss:$8 sps:$4 sm:$0xff]  }
 0x9a2   :  { %2646 = vmatpush1.bf16.msra.mxu1 %v4307_v11  ;;  %2899 = vmatpush1.bf16.msra.mxu0 %v4358_v45  ;;  %v4423_v45 = vld [vmem:[#allocation4 + $0x404] ss:$8 sps:$4 sm:$0xff]  }
 0x9a3   :  { %2647 = vmatprep.subr.bf16.mxu1 %v4312_v12  ;;  %2900 = vmatprep.subr.bf16.mxu0 %v4363_v46  ;;  %v4421_v46 = vld [vmem:[#allocation4 + $0x400] ss:$8 sps:$4 sm:$0xff]  }
 0x9a6   :  { %2648 = vmatpush1.bf16.msra.mxu1 %v4310_v13  ;;  %2901 = vmatpush1.bf16.msra.mxu0 %v4361_v47  ;;  %v4426_v47 = vld [vmem:[#allocation4 + $0x4f4] ss:$8 sps:$4 sm:$0xff]  }
 0x9a7   :  { %2649 = vmatprep.subr.bf16.mxu1 %v4315_v14  ;;  %2902 = vmatprep.subr.bf16.mxu0 %v4366_v48  ;;  %v4424_v48 = vld [vmem:[#allocation4 + $0x4f0] ss:$8 sps:$4 sm:$0xff]  }
 0x9aa   :  { %2650 = vmatpush1.bf16.msra.mxu1 %v4313_v15  ;;  %2903 = vmatpush1.bf16.msra.mxu0 %v4364_v49  ;;  %v4429_v49 = vld [vmem:[#allocation4 + $0x4e4] ss:$8 sps:$4 sm:$0xff]  }
 0x9ab   :  { %2651 = vmatprep.subr.bf16.mxu1 %v4318_v16  ;;  %2904 = vmatprep.subr.bf16.mxu0 %v4369_v50  ;;  %v4427_v50 = vld [vmem:[#allocation4 + $0x4e0] ss:$8 sps:$4 sm:$0xff]  }
 0x9ae   :  { %2652 = vmatpush1.bf16.msra.mxu1 %v4316_v17  ;;  %2905 = vmatpush1.bf16.msra.mxu0 %v4367_v51  ;;  %v4432_v51 = vld [vmem:[#allocation4 + $0x4d4] ss:$8 sps:$4 sm:$0xff]  }
 0x9af   :  { %2653 = vmatprep.subr.bf16.mxu1 %v4321_v19  ;;  %2906 = vmatprep.subr.bf16.mxu0 %v4372_v52  ;;  %v4430_v52 = vld [vmem:[#allocation4 + $0x4d0] ss:$8 sps:$4 sm:$0xff]  }
 0x9b2   :  { %2654 = vmatpush1.bf16.msra.mxu1 %v4319_v21  ;;  %2907 = vmatpush1.bf16.msra.mxu0 %v4370_v53  ;;  %v3625_v21 = vld [vmem:[%s4914_s11 + $0x16] sm:$0x3]  ;;  %v4435_v53 = vld [vmem:[#allocation4 + $0x4c4] ss:$8 sps:$4 sm:$0xff]  }
 0x9b3   :  { %2655 = vmatprep.subr.bf16.mxu1 %v4324_v22  ;;  %2908 = vmatprep.subr.bf16.mxu0 %v4375_v54  ;;  %v4433_v54 = vld [vmem:[#allocation4 + $0x4c0] ss:$8 sps:$4 sm:$0xff]  }
 0x9b6   :  { %2656 = vmatpush1.bf16.msra.mxu1 %v4322_v23  ;;  %2909 = vmatpush1.bf16.msra.mxu0 %v4373_v55  ;;  %v2141_v23 = vrot.slane %v3625_v21, %v4739_v18  ;;  %v4438_v55 = vld [vmem:[#allocation4 + $0x4b4] ss:$8 sps:$4 sm:$0xff]   ;;  %v4453_v21 = vld [vmem:[#allocation5 + $0xa8] sm:$0xff]  }
 0x9b7   :  { %2657 = vmatprep.subr.bf16.mxu1 %v4327_v24  ;;  %2910 = vmatprep.subr.bf16.mxu0 %v4378_v56  ;;  %v4436_v56 = vld [vmem:[#allocation4 + $0x4b0] ss:$8 sps:$4 sm:$0xff]  }
 0x9ba   :  { %2658 = vmatpush1.bf16.msra.mxu1 %v4325_v25  ;;  %2911 = vmatpush2.bf16.msra.mxu0 %v4376_v59  ;;  %v4441_v59 = vld [vmem:[#allocation4 + $0x4a4] ss:$8 sps:$4 sm:$0xff]  }
 0x9bb   :  { %2659 = vmatprep.subr.bf16.mxu1 %v4330_v26  ;;  %2912 = vmatprep.subr.bf16.mxu0 %v4381_v61  ;;  %v4439_v61 = vld [vmem:[#allocation4 + $0x4a0] ss:$8 sps:$4 sm:$0xff]  }
 0x9be   :  { %2660 = vmatpush2.bf16.msra.mxu1 %v4328_v27  ;;  %2913 = vmatpush2.bf16.msra.mxu0 %v4379_v62  ;;  %v3659_v62 = vld [vmem:[%s4914_s11 + $0x1a] sm:$0x3] }
 0x9bf   :  { %2661 = vmatprep.subr.bf16.mxu1 %v4333_v28  ;;  %2914 = vmatprep.subr.bf16.mxu0 %v4384_v63  ;;  %v2476_v63 = vrot.slane %v3659_v62, %v4739_v18 }
 0x9c2   :  { %2662 = vmatpush2.bf16.msra.mxu1 %v4331_v4  ;;  %2915 = vmatpush2.bf16.msra.mxu0 %v4382_v1  ;;  %v4396_v4 = vld [vmem:[#allocation4 + $0x394] ss:$8 sps:$4 sm:$0xff]   ;;  %v2480_v1 = vrot.slane %v3659_v62, %v4744_v20 }
 0x9c3   :  { %2663 = vmatprep.subr.bf16.mxu1 %v4336_v29  ;;  %2916 = vmatprep.subr.bf16.mxu0 %v4387_v2  ;;  %v4394_v29 = vld [vmem:[#allocation4 + $0x390] ss:$8 sps:$4 sm:$0xff]  }
 0x9c6   :  { %2664 = vmatpush2.bf16.msra.mxu1 %v4334_v30  ;;  %2917 = vmatpush2.bf16.msra.mxu0 %v4385_v3  ;;  %v4399_v30 = vld [vmem:[#allocation4 + $0x384] ss:$8 sps:$4 sm:$0xff]  }
 0x9c7   :  { %2665 = vmatprep.subr.bf16.mxu1 %v4339_v31  ;;  %2918 = vmatprep.subr.bf16.mxu0 %v4390_v5  ;;  %v4397_v31 = vld [vmem:[#allocation4 + $0x380] ss:$8 sps:$4 sm:$0xff]  }
 0x9ca   :  { %2666 = vmatpush2.bf16.msra.mxu1 %v4337_v32  ;;  %2919 = vmatpush2.bf16.msra.mxu0 %v4388_v6  ;;  %v4400_v32 = vld [vmem:[#allocation4 + $0x470] ss:$8 sps:$4 sm:$0xff]  }
 0x9cb   :  { %2667 = vmatprep.subr.bf16.mxu1 %v4342_v33  ;;  %2920 = vmatprep.subr.bf16.mxu0 %v4393_v7  ;;  %v4402_v33 = vld [vmem:[#allocation4 + $0x474] ss:$8 sps:$4 sm:$0xff]  }
 0x9ce   :  { %2668 = vmatpush2.bf16.msra.mxu1 %v4340_v34  ;;  %2921 = vmatpush2.bf16.msra.mxu0 %v4391_v57  ;;  %v4405_v34 = vld [vmem:[#allocation4 + $0x464] ss:$8 sps:$4 sm:$0xff]  }
 0x9cf   :  { %2669 = vmatprep.subr.bf16.mxu1 %v4345_v35  ;;  %2922 = vmatprep.subr.bf16.mxu0 %v4396_v4  ;;  %v4403_v35 = vld [vmem:[#allocation4 + $0x460] ss:$8 sps:$4 sm:$0xff]  }
 0x9d2   :  { %2670 = vmatpush2.bf16.msra.mxu1 %v4343_v36  ;;  %2923 = vmatpush2.bf16.msra.mxu0 %v4394_v29  ;;  %v4408_v36 = vld [vmem:[#allocation4 + $0x454] ss:$8 sps:$4 sm:$0xff]  }
 0x9d3   :  { %2671 = vmatprep.subr.bf16.mxu1 %v4348_v37  ;;  %2924 = vmatprep.subr.bf16.mxu0 %v4399_v30  ;;  %v4406_v37 = vld [vmem:[#allocation4 + $0x450] ss:$8 sps:$4 sm:$0xff]  }
 0x9d6   :  { %2672 = vmatpush2.bf16.msra.mxu1 %v4346_v38  ;;  %2925 = vmatpush2.bf16.msra.mxu0 %v4397_v31  ;;  %v4411_v38 = vld [vmem:[#allocation4 + $0x444] ss:$8 sps:$4 sm:$0xff]  }
 0x9d7   :  { %2673 = vmatprep.subr.bf16.mxu1 %v4351_v39  ;;  %v4409_v39 = vld [vmem:[#allocation4 + $0x440] ss:$8 sps:$4 sm:$0xff]  }
 0x9da   :  { %2674 = vmatpush2.bf16.msra.mxu1 %v4349_v40  ;;  %v4414_v40 = vld [vmem:[#allocation4 + $0x434] ss:$8 sps:$4 sm:$0xff]  }
 0x9db   :  { %3145 = vmatprep.subr.bf16.mxu1 %v4402_v33 }
 0xa59   :  { %v2426_v9 = vpop.f32.mrf.mxu0 }
 0xa5a   :  { %v2427_v10 = vadd.f32 %v2426_v9, %v2305_v58 }
 0xa5b   :  { %v2428_v11 = vpop.f32.mrf.mxu0 }
 0xa5c   :  { %v2429_v12 = vadd.f32 %v2428_v11, %v2309_v8  ;;  %v2433_v13 = vmax.f32 %v2427_v10, 0.0  ;;  %v4444_v10 = vld [vmem:[#allocation4 + $0x494] ss:$8 sps:$4 sm:$0xff]   ;;  %v4442_v11 = vld [vmem:[#allocation4 + $0x490] ss:$8 sps:$4 sm:$0xff]  }
 0xa5d   :  { %v2430_v14 = vpop.f32.mrf.mxu0  ;;  %v3853_v22 = vpop.f32.mrf.mxu1 }
 0xa5e   :  { %v2434_v15 = vmax.f32 %v2429_v12, 0.0  ;;  %v2470_v19 = vpack.c.bf16 %v2433_v13, %v2433_v13  ;;  %v4447_v12 = vld [vmem:[#allocation4 + $0x484] ss:$8 sps:$4 sm:$0xff]   ;;  %v4445_v13 = vld [vmem:[#allocation4 + $0x480] ss:$8 sps:$4 sm:$0xff]   ;;  %v4448_v14 = vld [vmem:[#allocation5 + $0xf8] sm:$0xff]  }
 0xa5f   :  { %v2431_v16 = vpop.f32.mrf.mxu0  ;;  %v3854_v24 = vpop.f32.mrf.mxu1  ;;  %3859 = vmatprep.subr.bf16.mxu0 %v4448_v14 }
 0xa60   :  { %v2471_v17 = vpack.c.bf16 %v2434_v15, %v2434_v15  ;;  %v3855_v25 = vadd.f32 %v3854_v24, %v3853_v22  ;;  %v4449_v15 = vld [vmem:[#allocation5 + $0xb8] sm:$0xff]   ;;  %v4450_v16 = vld [vmem:[#allocation5 + $0xf0] sm:$0xff]   ;;  %v4454_v22 = vld [vmem:[#allocation5 + $0xe0] sm:$0xff]  }
 0xa61   :  { %v3856_v26 = vpop.f32.mrf.mxu1  ;;  %v4456_v24 = vld [vmem:[#allocation5 + $0xd8] sm:$0xff]  }
 0xa62   :  { %2675 = vmatprep.mubr.bf16.mxu1 %v2471_v17  ;;  %v2274_v27 = vadd.f32 %v3855_v25, %v2141_v23  ;;  %v4451_v17 = vld [vmem:[#allocation5 + $0xb0] sm:$0xff]   ;;  %v4455_v23 = vld [vmem:[#allocation5 + $0xa0] sm:$0xff]   ;;  %v4457_v25 = vld [vmem:[#allocation5 + $0x98] sm:$0xff]  }
 0xa63   :  { %2676 = vmatmul.mubr.bf16.vlgmr.msra.gmra.mxu1 %v2470_v19  ;;  %v3857_v28 = vpop.f32.mrf.mxu1  ;;  %v4452_v19 = vld [vmem:[#allocation5 + $0xe8] sm:$0xff]   ;;  %v4458_v26 = vld [vmem:[#allocation5 + $0xd0] sm:$0xff]  }
 0xa64   :  { %3367 = vst [vmem:[%s4915_s12] sm:$0xff] %v2274_v27  ;;  %3146 = vmatpush1.bf16.msra.mxu1 %v4400_v32  ;;  %v4459_v27 = vld [vmem:[#allocation5 + $0x90] sm:$0xff]   ;;  %v3692_v28 = vld [vmem:[%s4914_s11 + $0x1c] sm:$0x3] }
 0xa65   :  { %3147 = vmatprep.subr.bf16.mxu1 %v4405_v34  ;;  %v2727_v4 = vrot.slane %v3692_v28, %v4739_v18  ;;  %v2731_v29 = vrot.slane %v3692_v28, %v4744_v20 }
 0xa68   :  { %3148 = vmatpush1.bf16.msra.mxu1 %v4403_v35 }
 0xa69   :  { %3149 = vmatprep.subr.bf16.mxu1 %v4408_v36 }
 0xa6c   :  { %3150 = vmatpush1.bf16.msra.mxu1 %v4406_v37 }
 0xa6d   :  { %3151 = vmatprep.subr.bf16.mxu1 %v4411_v38 }
 0xa70   :  { %3152 = vmatpush1.bf16.msra.mxu1 %v4409_v39 }
 0xa71   :  { %3153 = vmatprep.subr.bf16.mxu1 %v4414_v40  ;;  %v4460_v40 = vld [vmem:[#allocation5 + $0xc8] sm:$0xff]  }
 0xa74   :  { %3154 = vmatpush1.bf16.msra.mxu1 %v4412_v41  ;;  %v4461_v41 = vld [vmem:[#allocation5 + $0x88] sm:$0xff]  }
 0xa75   :  { %3155 = vmatprep.subr.bf16.mxu1 %v4417_v42  ;;  %v4462_v42 = vld [vmem:[#allocation5 + $0xc0] sm:$0xff]  }
 0xa78   :  { %3156 = vmatpush1.bf16.msra.mxu1 %v4415_v43  ;;  %v4463_v43 = vld [vmem:[#allocation5 + $0x80] sm:$0xff]  }
 0xa79   :  { %3157 = vmatprep.subr.bf16.mxu1 %v4420_v44  ;;  %v3725_v44 = vld [vmem:[%s4914_s11 + $0x1e] sm:$0x3] }
 0xa7c   :  { %3158 = vmatpush1.bf16.msra.mxu1 %v4418_v0  ;;  %v2978_v0 = vrot.slane %v3725_v44, %v4739_v18 }
 0xa7d   :  { %3159 = vmatprep.subr.bf16.mxu1 %v4423_v45  ;;  %v2982_v45 = vrot.slane %v3725_v44, %v4744_v20 }
 0xa80   :  { %3160 = vmatpush1.bf16.msra.mxu1 %v4421_v46 }
 0xa81   :  { %3161 = vmatprep.subr.bf16.mxu1 %v4426_v47 }
 0xa84   :  { %3162 = vmatpush2.bf16.msra.mxu1 %v4424_v48 }
 0xa85   :  { %3163 = vmatprep.subr.bf16.mxu1 %v4429_v49 }
 0xa88   :  { %3164 = vmatpush2.bf16.msra.mxu1 %v4427_v50 }
 0xa89   :  { %3165 = vmatprep.subr.bf16.mxu1 %v4432_v51 }
 0xa8c   :  { %3166 = vmatpush2.bf16.msra.mxu1 %v4430_v52 }
 0xa8d   :  { %3167 = vmatprep.subr.bf16.mxu1 %v4435_v53 }
 0xa90   :  { %3168 = vmatpush2.bf16.msra.mxu1 %v4433_v54 }
 0xa91   :  { %3169 = vmatprep.subr.bf16.mxu1 %v4438_v55 }
 0xa94   :  { %3170 = vmatpush2.bf16.msra.mxu1 %v4436_v56  ;;  %v3758_v56 = vld [vmem:[%s4914_s11 + $0x20] sm:$0x3] }
 0xa95   :  { %3171 = vmatprep.subr.bf16.mxu1 %v4441_v59 }
 0xa98   :  { %3172 = vmatpush2.bf16.msra.mxu1 %v4439_v61  ;;  %v3229_v61 = vrot.slane %v3758_v56, %v4739_v18 }
 0xa99   :  { %3173 = vmatprep.subr.bf16.mxu1 %v4444_v10 }
 0xa9c   :  { %3174 = vmatpush2.bf16.msra.mxu1 %v4442_v11 }
 0xa9d   :  { %3175 = vmatprep.subr.bf16.mxu1 %v4447_v12 }
 0xaa0   :  { %3176 = vmatpush2.bf16.msra.mxu1 %v4445_v13 }
 0xb23   :  { %v2677_v2 = vpop.f32.mrf.mxu1 }
 0xb24   :  { %v2678_v3 = vadd.f32 %v2677_v2, %v2476_v63 }
 0xb25   :  { %v2679_v5 = vpop.f32.mrf.mxu1 }
 0xb26   :  { %v2680_v6 = vadd.f32 %v2679_v5, %v2480_v1  ;;  %v2684_v7 = vmax.f32 %v2678_v3, 0.0 }
 0xb27   :  { %v2681_v57 = vpop.f32.mrf.mxu1 }
 0xb28   :  { %v2685_v60 = vmax.f32 %v2680_v6, 0.0  ;;  %v2721_v9 = vpack.c.bf16 %v2684_v7, %v2684_v7 }
 0xb29   :  { %v2682_v58 = vpop.f32.mrf.mxu1 }
 0xb2a   :  { %v2722_v8 = vpack.c.bf16 %v2685_v60, %v2685_v60 }
 0xb2c   :  { %2926 = vmatprep.mubr.bf16.mxu0 %v2722_v8 }
 0xb2d   :  { %2927 = vmatmul.mubr.bf16.vlgmr.msra.gmra.mxu0 %v2721_v9 }
 0xb2e   :  { %3860 = vmatpush3.bf16.msra.mxu0 %v4449_v15 }
 0xb2f   :  { %3861 = vmatprep.subr.bf16.mxu0 %v4450_v16 }
 0xb32   :  { %3862 = vmatpush3.bf16.msra.mxu0 %v4451_v17 }
 0xb33   :  { %3863 = vmatprep.subr.bf16.mxu0 %v4452_v19 }
 0xb36   :  { %3864 = vmatpush3.bf16.msra.mxu0 %v4453_v21 }
 0xb37   :  { %3865 = vmatprep.subr.bf16.mxu0 %v4454_v22 }
 0xb3a   :  { %3866 = vmatpush3.bf16.msra.mxu0 %v4455_v23 }
 0xb3b   :  { %3867 = vmatprep.subr.bf16.mxu0 %v4456_v24 }
 0xb3e   :  { %3868 = vmatpush3.bf16.msra.mxu0 %v4457_v25 }
 0xb3f   :  { %3869 = vmatprep.subr.bf16.mxu0 %v4458_v26 }
 0xb42   :  { %3870 = vmatpush3.bf16.msra.mxu0 %v4459_v27 }
 0xb43   :  { %3871 = vmatprep.subr.bf16.mxu0 %v4460_v40 }
 0xb46   :  { %3872 = vmatpush3.bf16.msra.mxu0 %v4461_v41 }
 0xb47   :  { %3873 = vmatprep.subr.bf16.mxu0 %v4462_v42 }
 0xb4a   :  { %3874 = vmatpush3.bf16.msra.mxu0 %v4463_v43 }
 0xbed   :  { %v2928_v30 = vpop.f32.mrf.mxu0 }
 0xbee   :  { %v2929_v31 = vadd.f32 %v2928_v30, %v2727_v4 }
 0xbef   :  { %v2930_v32 = vpop.f32.mrf.mxu0 }
 0xbf0   :  { %v2931_v33 = vadd.f32 %v2930_v32, %v2731_v29  ;;  %v2935_v34 = vmax.f32 %v2929_v31, 0.0 }
 0xbf1   :  { %v2932_v35 = vpop.f32.mrf.mxu0 }
 0xbf2   :  { %v2936_v36 = vmax.f32 %v2931_v33, 0.0  ;;  %v2972_v39 = vpack.c.bf16 %v2935_v34, %v2935_v34 }
 0xbf3   :  { %v2933_v37 = vpop.f32.mrf.mxu0 }
 0xbf4   :  { %v2973_v38 = vpack.c.bf16 %v2936_v36, %v2936_v36 }
 0xbf6   :  { %3177 = vmatprep.mubr.bf16.mxu1 %v2973_v38 }
 0xbf7   :  { %3178 = vmatmul.mubr.bf16.vlgmr.msra.gmra.mxu1 %v2972_v39 }
 0xcb7   :  { %v3179_v46 = vpop.f32.mrf.mxu1 }
 0xcb8   :  { %v3180_v47 = vadd.f32 %v3179_v46, %v2978_v0 }
 0xcb9   :  { %v3181_v48 = vpop.f32.mrf.mxu1 }
 0xcba   :  { %v3182_v49 = vadd.f32 %v3181_v48, %v2982_v45  ;;  %v3186_v50 = vmax.f32 %v3180_v47, 0.0 }
 0xcbb   :  { %v3183_v51 = vpop.f32.mrf.mxu1 }
 0xcbc   :  { %v3187_v52 = vmax.f32 %v3182_v49, 0.0  ;;  %v3223_v55 = vpack.c.bf16 %v3186_v50, %v3186_v50 }
 0xcbd   :  { %v3184_v53 = vpop.f32.mrf.mxu1 }
 0xcbe   :  { %v3224_v54 = vpack.c.bf16 %v3187_v52, %v3187_v52 }
 0xcc0   :  { %3359 = vmatprep.mubr.bf16.mxu0 %v3224_v54 }
 0xcc1   :  { %3360 = vmatmul.mubr.bf16.vlgmr.msra.gmra.mxu0 %v3223_v55 }
 0xd81   :  { %v3875_v59 = vpop.f32.mrf.mxu0 }
 0xd83   :  { %v3876_v20 = vpop.f32.mrf.mxu0 }
 0xd84   :  { %v3877_v62 = vadd.f32 %v3876_v20, %v3875_v59 }
 0xd85   :  { %v3878_v63 = vpop.f32.mrf.mxu0 }
 0xd86   :  { %v3362_v1 = vadd.f32 %v3877_v62, %v3229_v61 }
 0xd87   :  { %v3879_v2 = vpop.f32.mrf.mxu0 }
 0xd88   :  { %3368 = vst [vmem:[%s4916_s13] sm:$0xff] %v3362_v1 }
 0xd89   :  { %3377 = vsyncpa [#allocation8], 1 }
 0xd8a   :  { %3378 = vsyncpa [#allocation10], 1 }
 0xd8b   :  { %3379 = vsyncpa [#allocation13], 1 }
 0xd8c   :  { %3380 = vsyncmov [#allocation6] }
 0xd8f   :  { %s3381_s20 = vpop.sfrf %3380 }
 0xd90   :  { %p3775_p12 = scmp.ne.s32.totalorder %s3381_s20, 0 }
 0xd92   :  { %3385 = shalt.err (%p3775_p12)  }
 0xd93   :  { %3387 = vsyncmov [#allocation6 + $0x1] }
 0xd96   :  { %s3388_s11 = vpop.sfrf %3387 }
 0xd97   :  { %p3776_p13 = scmp.ne.s32.totalorder %s3388_s11, 0 }
 0xd99   :  { %3392 = shalt.err (%p3776_p13)  }
 0xd9a   :  { %3394 = vsyncmov [#allocation6 + $0x2] }
 0xd9d   :  { %s3395_s1 = vpop.sfrf %3394 }
 0xd9e   :  { %p3777_p0 = scmp.ne.s32.totalorder %s3395_s1, 0 }
 0xda0   :  { %3399 = shalt.err (%p3777_p0)  }
 0xda1   :  { %3401 = vsyncmov [#allocation6 + $0x3] }
 0xda4   :  { %s3402_s10 = vpop.sfrf %3401 }
 0xda5   :  { %p3778_p1 = scmp.ne.s32.totalorder %s3402_s10, 0 }
 0xda7   :  { %3406 = shalt.err (%p3778_p1)  }

</bundles_post_ra>
